<compile_context>
chip_gen: v6e
topology: v6e:2x2x1
jax: 0.10.0
libtpu: 0.0.40
codegen_flags: <defaults>
</compile_context>

<pallas_src>
import math

import jax
import jax.numpy as jnp
from jax.experimental import pallas as pl
from jax.experimental.pallas import tpu as pltpu

# ---------------- small synthetic ModernBERT-ish config ----------------
VOCAB = 64
HIDDEN = 32
NUM_HEADS = 2
HEAD_DIM = HIDDEN // NUM_HEADS
INTERMEDIATE = 48          # GeGLU: Wi is (H, 2*INTERMEDIATE)
NUM_LAYERS = 2
NUM_LABELS = 2
LN_EPS = 1e-5
BATCH = 2
SEQ = 8
LANE_PAD = 128             # lane-dense output slab width


# ---------------- in-kernel helper ----------------
def _ln(x, eps=LN_EPS):
    # bias-free LayerNorm without gamma (gammas are folded into the weights
    # that consume the normalized activation).
    mean = jnp.mean(x, axis=-1, keepdims=True)
    var = jnp.mean((x - mean) ** 2, axis=-1, keepdims=True)
    return (x - mean) * jax.lax.rsqrt(var + eps)


# ---------------- fused forward kernel ----------------
def _fused_forward_kernel(x_ref, bias_ref, cos_ref, sin_ref, rot_ref,
                          emb_ln_ref, wqkv_ref, wo_attn_ref, wi_ref,
                          wo_mlp_ref, cls_w_ref, cls_b_ref, out_ref):
    """Whole CustomModernBERTModel forward on one resident (B,S,H) tile."""
    B, S, H = x_ref.shape
    BS = B * S
    inv_sqrt_hd = 1.0 / math.sqrt(HEAD_DIM)

    cos = cos_ref[...]        # (B*S, H)  RoPE cos, tiled per head & batch
    sin = sin_ref[...]        # (B*S, H)
    rot = rot_ref[...]        # (H, H)    block-diag rotate_half matrix
    bias = bias_ref[...]      # (B, 1, S) additive key mask (0 or -1e9)

    # embedding LayerNorm (gamma kept; its output IS the residual stream)
    x = _ln(x_ref[...].reshape(BS, H)) * emb_ln_ref[...]      # (B*S, H)

    # TODO(synk): real ModernBERT alternates local sliding-window / global
    # attention and uses Identity for layer-0 attn_norm; here every layer is
    # global attention with a LayerNorm (semantics of the synthetic backbone).
    for l in range(NUM_LAYERS):                 # static unroll, weights differ
        wqkv = wqkv_ref[l]                      # (H, 3H)   ln1 gamma folded in
        wo_a = wo_attn_ref[l]                   # (H, H)
        wi = wi_ref[l]                          # (H, 2I)   ln2 gamma folded in
        wo_m = wo_mlp_ref[l]                    # (I, H)

        # ---- attention block (pre-norm) ----
        h = _ln(x)
        qkv = jnp.dot(h, wqkv, preferred_element_type=jnp.float32)   # (BS, 3H)
        q = qkv[:, 0 * H:1 * H]
        k = qkv[:, 1 * H:2 * H]
        v = qkv[:, 2 * H:3 * H]

        # RoPE via rotation matmul: rope(t) = t*cos + rotate_half(t)*sin,
        # rotate_half(t) == t @ rot (block-diagonal, sign baked in).
        q = q * cos + jnp.dot(q, rot, preferred_element_type=jnp.float32) * sin
        k = k * cos + jnp.dot(k, rot, preferred_element_type=jnp.float32) * sin

        attn = jnp.zeros((BS, H), jnp.float32)
        for hh in range(NUM_HEADS):             # short static unroll over heads
            sl = slice(hh * HEAD_DIM, (hh + 1) * HEAD_DIM)
            qh = q[:, sl].reshape(B, S, HEAD_DIM)
            kh = k[:, sl].reshape(B, S, HEAD_DIM)
            vh = v[:, sl].reshape(B, S, HEAD_DIM)

            s = jnp.einsum('bqd,bkd->bqk', qh, kh,
                           preferred_element_type=jnp.float32) * inv_sqrt_hd
            s = s + bias                                        # (B, S, S)
            s = s - jnp.max(s, axis=-1, keepdims=True)
            p = jnp.exp(s)
            p = p * pl.reciprocal(jnp.sum(p, axis=-1, keepdims=True),
                                  approx=True)
            ctx = jnp.einsum('bqk,bkd->bqd', p, vh,
                             preferred_element_type=jnp.float32)  # (B,S,hd)
            # fold this head through its row-block of Wo (no head concat)
            attn = attn + jnp.dot(ctx.reshape(BS, HEAD_DIM), wo_a[sl, :],
                                  preferred_element_type=jnp.float32)
        x = x + attn

        # ---- GeGLU MLP block (pre-norm) ----
        h = _ln(x)
        u = jnp.dot(h, wi, preferred_element_type=jnp.float32)    # (BS, 2I)
        # TODO(synk): HF ModernBERT uses exact (erf) GELU; tanh approx here.
        act = jax.nn.gelu(u[:, :INTERMEDIATE], approximate=True) \
            * u[:, INTERMEDIATE:]
        x = x + jnp.dot(act, wo_m, preferred_element_type=jnp.float32)

    # ---- final LN (gamma folded into cls_w), CLS pooling, classifier ----
    cls = _ln(x.reshape(B, S, H)[:, 0, :])                        # (B, H)
    # dropout is identity at inference; logits written lane-dense (B, 128)
    out_ref[...] = (jnp.dot(cls, cls_w_ref[...],
                            preferred_element_type=jnp.float32)
                    + cls_b_ref[...])


# ---------------- host-side parameter / table construction ----------------
def rope_tables(seq, hd, base=10000.0):
    inv = 1.0 / (base ** (jnp.arange(0, hd, 2, dtype=jnp.float32) / hd))
    t = jnp.arange(seq, dtype=jnp.float32)
    freqs = jnp.outer(t, inv)                       # (S, hd/2)
    emb = jnp.concatenate([freqs, freqs], axis=-1)  # (S, hd)
    return jnp.cos(emb), jnp.sin(emb)


def init_params(key):
    keys = jax.random.split(key, 2 + NUM_LAYERS)

    def dense(k, shape, scale=0.02):
        return (scale * jax.random.normal(k, shape)).astype(jnp.float32)

    emb_ln = jnp.ones((1, HIDDEN), jnp.float32)
    final_ln = jnp.ones((HIDDEN,), jnp.float32)

    # classifier: fold final_ln gamma into weight rows, pad lanes to 128
    cls_w = dense(keys[1], (HIDDEN, NUM_LABELS)) * final_ln[:, None]
    cls_b = jnp.zeros((NUM_LABELS,), jnp.float32)
    cls_w_pad = jnp.zeros((HIDDEN, LANE_PAD), jnp.float32)
    cls_w_pad = cls_w_pad.at[:, :NUM_LABELS].set(cls_w)
    cls_b_pad = jnp.zeros((1, LANE_PAD), jnp.float32)
    cls_b_pad = cls_b_pad.at[0, :NUM_LABELS].set(cls_b)

    # per-layer weights, LN gammas folded in, stacked with leading L axis
    wqkv_l, wo_attn_l, wi_l, wo_mlp_l = [], [], [], []
    for l in range(NUM_LAYERS):
        lk = jax.random.split(keys[2 + l], 4)
        ln1 = jnp.ones((HIDDEN,), jnp.float32)
        ln2 = jnp.ones((HIDDEN,), jnp.float32)
        wqkv_l.append(dense(lk[0], (HIDDEN, 3 * HIDDEN)) * ln1[:, None])
        wo_attn_l.append(dense(lk[1], (HIDDEN, HIDDEN)))
        wi_l.append(dense(lk[2], (HIDDEN, 2 * INTERMEDIATE)) * ln2[:, None])
        wo_mlp_l.append(dense(lk[3], (INTERMEDIATE, HIDDEN)))

    # RoPE tables tiled over heads (S, H) and block-diag rotate_half matrix
    cos_h, sin_h = rope_tables(SEQ, HEAD_DIM)
    cos_full = jnp.tile(cos_h, (1, NUM_HEADS))       # (S, H)
    sin_full = jnp.tile(sin_h, (1, NUM_HEADS))       # (S, H)
    half = HEAD_DIM // 2
    eye = jnp.eye(half, dtype=jnp.float32)
    zer = jnp.zeros((half, half), jnp.float32)
    r_head = jnp.block([[zer, eye], [-eye, zer]])    # t @ R == rotate_half(t)
    r_full = jnp.kron(jnp.eye(NUM_HEADS, dtype=jnp.float32), r_head)  # (H, H)

    return {
        "tok_emb": dense(keys[0], (VOCAB, HIDDEN)),
        "emb_ln": emb_ln,
        "cos": cos_full, "sin": sin_full, "rot": r_full,
        "wqkv": jnp.stack(wqkv_l),       # (L, H, 3H)
        "wo_attn": jnp.stack(wo_attn_l),  # (L, H, H)
        "wi": jnp.stack(wi_l),           # (L, H, 2I)
        "wo_mlp": jnp.stack(wo_mlp_l),   # (L, I, H)
        "cls_w_pad": cls_w_pad,          # (H, 128)
        "cls_b_pad": cls_b_pad,          # (1, 128)
    }


# ---------------- wrapper ----------------
def forward(params, input_ids, attention_mask):
    # Embedding lookup is glue (gather) in plain JAX.
    x = jnp.take(params["tok_emb"], input_ids, axis=0)          # (B, S, H)
    B, S, _ = x.shape

    # precompute once: additive key mask and batch-tiled RoPE tables
    neg_bias = (attention_mask.astype(jnp.float32) - 1.0)[:, None, :] * 1e9
    cos_bs = jnp.tile(params["cos"], (B, 1))                    # (B*S, H)
    sin_bs = jnp.tile(params["sin"], (B, 1))                    # (B*S, H)

    logits_padded = pl.pallas_call(
        _fused_forward_kernel,
        out_shape=jax.ShapeDtypeStruct((B, LANE_PAD), jnp.float32),
        in_specs=[pl.BlockSpec(memory_space=pltpu.MemorySpace.VMEM)] * 12,
        out_specs=pl.BlockSpec(memory_space=pltpu.MemorySpace.VMEM),
    )(x, neg_bias, cos_bs, sin_bs, params["rot"], params["emb_ln"],
      params["wqkv"], params["wo_attn"], params["wi"], params["wo_mlp"],
      params["cls_w_pad"], params["cls_b_pad"])

    return logits_padded[:, :NUM_LABELS]                        # (B, num_labels)


if __name__ == "__main__":
    key = jax.random.PRNGKey(0)
    k_param, k_ids = jax.random.split(key)

    params = init_params(k_param)

    input_ids = jax.random.randint(k_ids, (BATCH, SEQ), 0, VOCAB, dtype=jnp.int32)
    attention_mask = jnp.ones((BATCH, SEQ), dtype=jnp.int32)
    attention_mask = attention_mask.at[1, SEQ - 2:].set(0)  # padding on batch 1

    logits = forward(params, input_ids, attention_mask)
    jax.block_until_ready(logits)
    assert logits.shape == (BATCH, NUM_LABELS)
    print("KERNEL_OK")
</pallas_src>

<mosaic_0001>
module attributes {stable_mosaic.version = 11 : i64} {
  func.func @_fused_forward_kernel(%arg0: memref<2x8x32xf32, #tpu.memory_space<vmem>>, %arg1: memref<2x1x8xf32, #tpu.memory_space<vmem>>, %arg2: memref<16x32xf32, #tpu.memory_space<vmem>>, %arg3: memref<16x32xf32, #tpu.memory_space<vmem>>, %arg4: memref<32x32xf32, #tpu.memory_space<vmem>>, %arg5: memref<1x32xf32, #tpu.memory_space<vmem>>, %arg6: memref<2x32x96xf32, #tpu.memory_space<vmem>>, %arg7: memref<2x32x32xf32, #tpu.memory_space<vmem>>, %arg8: memref<2x32x96xf32, #tpu.memory_space<vmem>>, %arg9: memref<2x48x32xf32, #tpu.memory_space<vmem>>, %arg10: memref<32x128xf32, #tpu.memory_space<vmem>>, %arg11: memref<1x128xf32, #tpu.memory_space<vmem>>, %arg12: memref<2x128xf32, #tpu.memory_space<vmem>>) attributes {dimension_semantics = [], scalar_prefetch = 0 : i64, scratch_operands = 0 : i64, tpu.core_type = #tpu.core_type<tc>} {
    %c0 = arith.constant 0 : index
    %c0_0 = arith.constant 0 : index
    %0 = vector.load %arg2[%c0, %c0_0] : memref<16x32xf32, #tpu.memory_space<vmem>>, vector<16x32xf32>
    %c0_1 = arith.constant 0 : index
    %c0_2 = arith.constant 0 : index
    %1 = vector.load %arg3[%c0_1, %c0_2] : memref<16x32xf32, #tpu.memory_space<vmem>>, vector<16x32xf32>
    %c0_3 = arith.constant 0 : index
    %c0_4 = arith.constant 0 : index
    %2 = vector.load %arg4[%c0_3, %c0_4] : memref<32x32xf32, #tpu.memory_space<vmem>>, vector<32x32xf32>
    %c0_5 = arith.constant 0 : index
    %c0_6 = arith.constant 0 : index
    %c0_7 = arith.constant 0 : index
    %3 = vector.load %arg1[%c0_5, %c0_6, %c0_7] : memref<2x1x8xf32, #tpu.memory_space<vmem>>, vector<2x1x8xf32>
    %c0_8 = arith.constant 0 : index
    %c0_9 = arith.constant 0 : index
    %c0_10 = arith.constant 0 : index
    %4 = vector.load %arg0[%c0_8, %c0_9, %c0_10] : memref<2x8x32xf32, #tpu.memory_space<vmem>>, vector<2x8x32xf32>
    %5 = vector.shape_cast %4 : vector<2x8x32xf32> to vector<16x32xf32>
    %cst = arith.constant dense<0.000000e+00> : vector<16xf32>
    %6 = vector.multi_reduction <add>, %5, %cst [1] : vector<16x32xf32> to vector<16xf32>
    %7 = vector.shape_cast %6 : vector<16xf32> to vector<16x1xf32>
    %cst_11 = arith.constant 3.200000e+01 : f32
    %8 = vector.broadcast %cst_11 : f32 to vector<16x1xf32>
    %9 = arith.divf %7, %8 : vector<16x1xf32>
    %10 = vector.broadcast %9 : vector<16x1xf32> to vector<16x32xf32>
    %11 = arith.subf %5, %10 : vector<16x32xf32>
    %12 = arith.mulf %11, %11 : vector<16x32xf32>
    %cst_12 = arith.constant dense<0.000000e+00> : vector<16xf32>
    %13 = vector.multi_reduction <add>, %12, %cst_12 [1] : vector<16x32xf32> to vector<16xf32>
    %14 = vector.shape_cast %13 : vector<16xf32> to vector<16x1xf32>
    %cst_13 = arith.constant 3.200000e+01 : f32
    %15 = vector.broadcast %cst_13 : f32 to vector<16x1xf32>
    %16 = arith.divf %14, %15 : vector<16x1xf32>
    %17 = vector.broadcast %9 : vector<16x1xf32> to vector<16x32xf32>
    %18 = arith.subf %5, %17 : vector<16x32xf32>
    %cst_14 = arith.constant 9.99999974E-6 : f32
    %19 = vector.broadcast %cst_14 : f32 to vector<16x1xf32>
    %20 = arith.addf %16, %19 : vector<16x1xf32>
    %21 = math.rsqrt %20 : vector<16x1xf32>
    %22 = vector.broadcast %21 : vector<16x1xf32> to vector<16x32xf32>
    %23 = arith.mulf %18, %22 : vector<16x32xf32>
    %c0_15 = arith.constant 0 : index
    %c0_16 = arith.constant 0 : index
    %24 = vector.load %arg5[%c0_15, %c0_16] : memref<1x32xf32, #tpu.memory_space<vmem>>, vector<1x32xf32>
    %25 = vector.broadcast %24 : vector<1x32xf32> to vector<16x32xf32>
    %26 = arith.mulf %23, %25 : vector<16x32xf32>
    %c0_17 = arith.constant 0 : index
    %c0_18 = arith.constant 0 : index
    %c0_19 = arith.constant 0 : index
    %27 = vector.load %arg6[%c0_17, %c0_18, %c0_19] : memref<2x32x96xf32, #tpu.memory_space<vmem>>, vector<1x32x96xf32>
    %28 = vector.shape_cast %27 : vector<1x32x96xf32> to vector<32x96xf32>
    %c0_20 = arith.constant 0 : index
    %c0_21 = arith.constant 0 : index
    %c0_22 = arith.constant 0 : index
    %29 = vector.load %arg7[%c0_20, %c0_21, %c0_22] : memref<2x32x32xf32, #tpu.memory_space<vmem>>, vector<1x32x32xf32>
    %30 = vector.shape_cast %29 : vector<1x32x32xf32> to vector<32x32xf32>
    %c0_23 = arith.constant 0 : index
    %c0_24 = arith.constant 0 : index
    %c0_25 = arith.constant 0 : index
    %31 = vector.load %arg8[%c0_23, %c0_24, %c0_25] : memref<2x32x96xf32, #tpu.memory_space<vmem>>, vector<1x32x96xf32>
    %32 = vector.shape_cast %31 : vector<1x32x96xf32> to vector<32x96xf32>
    %c0_26 = arith.constant 0 : index
    %c0_27 = arith.constant 0 : index
    %c0_28 = arith.constant 0 : index
    %33 = vector.load %arg9[%c0_26, %c0_27, %c0_28] : memref<2x48x32xf32, #tpu.memory_space<vmem>>, vector<1x48x32xf32>
    %34 = vector.shape_cast %33 : vector<1x48x32xf32> to vector<48x32xf32>
    %cst_29 = arith.constant dense<0.000000e+00> : vector<16xf32>
    %35 = vector.multi_reduction <add>, %26, %cst_29 [1] : vector<16x32xf32> to vector<16xf32>
    %36 = vector.shape_cast %35 : vector<16xf32> to vector<16x1xf32>
    %cst_30 = arith.constant 3.200000e+01 : f32
    %37 = vector.broadcast %cst_30 : f32 to vector<16x1xf32>
    %38 = arith.divf %36, %37 : vector<16x1xf32>
    %39 = vector.broadcast %38 : vector<16x1xf32> to vector<16x32xf32>
    %40 = arith.subf %26, %39 : vector<16x32xf32>
    %41 = arith.mulf %40, %40 : vector<16x32xf32>
    %cst_31 = arith.constant dense<0.000000e+00> : vector<16xf32>
    %42 = vector.multi_reduction <add>, %41, %cst_31 [1] : vector<16x32xf32> to vector<16xf32>
    %43 = vector.shape_cast %42 : vector<16xf32> to vector<16x1xf32>
    %cst_32 = arith.constant 3.200000e+01 : f32
    %44 = vector.broadcast %cst_32 : f32 to vector<16x1xf32>
    %45 = arith.divf %43, %44 : vector<16x1xf32>
    %46 = vector.broadcast %38 : vector<16x1xf32> to vector<16x32xf32>
    %47 = arith.subf %26, %46 : vector<16x32xf32>
    %cst_33 = arith.constant 9.99999974E-6 : f32
    %48 = vector.broadcast %cst_33 : f32 to vector<16x1xf32>
    %49 = arith.addf %45, %48 : vector<16x1xf32>
    %50 = math.rsqrt %49 : vector<16x1xf32>
    %51 = vector.broadcast %50 : vector<16x1xf32> to vector<16x32xf32>
    %52 = arith.mulf %47, %51 : vector<16x32xf32>
    %cst_34 = arith.constant dense<0.000000e+00> : vector<16x96xf32>
    %53 = tpu.matmul %52, %28, %cst_34 {dimension_numbers = #tpu.dot_dimension_numbers<[1], [0], [0], [1], [0, 0, 1, 1], [], []>} : vector<16x32xf32>, vector<32x96xf32>, vector<16x96xf32> -> vector<16x96xf32>
    %54 = vector.extract_strided_slice %53 {offsets = [0, 0], sizes = [16, 32], strides = [1, 1]} : vector<16x96xf32> to vector<16x32xf32>
    %55 = vector.extract_strided_slice %53 {offsets = [0, 32], sizes = [16, 32], strides = [1, 1]} : vector<16x96xf32> to vector<16x32xf32>
    %56 = vector.extract_strided_slice %53 {offsets = [0, 64], sizes = [16, 32], strides = [1, 1]} : vector<16x96xf32> to vector<16x32xf32>
    %57 = arith.mulf %54, %0 : vector<16x32xf32>
    %cst_35 = arith.constant dense<0.000000e+00> : vector<16x32xf32>
    %58 = tpu.matmul %54, %2, %cst_35 {dimension_numbers = #tpu.dot_dimension_numbers<[1], [0], [0], [1], [0, 0, 1, 1], [], []>} : vector<16x32xf32>, vector<32x32xf32>, vector<16x32xf32> -> vector<16x32xf32>
    %59 = arith.mulf %58, %1 : vector<16x32xf32>
    %60 = arith.addf %57, %59 : vector<16x32xf32>
    %61 = arith.mulf %55, %0 : vector<16x32xf32>
    %cst_36 = arith.constant dense<0.000000e+00> : vector<16x32xf32>
    %62 = tpu.matmul %55, %2, %cst_36 {dimension_numbers = #tpu.dot_dimension_numbers<[1], [0], [0], [1], [0, 0, 1, 1], [], []>} : vector<16x32xf32>, vector<32x32xf32>, vector<16x32xf32> -> vector<16x32xf32>
    %63 = arith.mulf %62, %1 : vector<16x32xf32>
    %64 = arith.addf %61, %63 : vector<16x32xf32>
    %cst_37 = arith.constant 0.000000e+00 : f32
    %65 = vector.broadcast %cst_37 : f32 to vector<16x32xf32>
    %66 = vector.extract_strided_slice %60 {offsets = [0, 0], sizes = [16, 16], strides = [1, 1]} : vector<16x32xf32> to vector<16x16xf32>
    %67 = vector.shape_cast %66 : vector<16x16xf32> to vector<2x8x16xf32>
    %68 = vector.extract_strided_slice %64 {offsets = [0, 0], sizes = [16, 16], strides = [1, 1]} : vector<16x32xf32> to vector<16x16xf32>
    %69 = vector.shape_cast %68 : vector<16x16xf32> to vector<2x8x16xf32>
    %70 = vector.extract_strided_slice %56 {offsets = [0, 0], sizes = [16, 16], strides = [1, 1]} : vector<16x32xf32> to vector<16x16xf32>
    %71 = vector.shape_cast %70 : vector<16x16xf32> to vector<2x8x16xf32>
    "tpu.trace_start"() <{level = 10 : i32, message = "bqd,bkd->bqk"}> : () -> ()
    %cst_38 = arith.constant dense<0.000000e+00> : vector<2x8x8xf32>
    %72 = tpu.matmul %67, %69, %cst_38 {dimension_numbers = #tpu.dot_dimension_numbers<[2], [2], [1], [1], [0, 0, 0, 1, 1, 1], [0], [0]>} : vector<2x8x16xf32>, vector<2x8x16xf32>, vector<2x8x8xf32> -> vector<2x8x8xf32>
    "tpu.trace_stop"() : () -> ()
    %cst_39 = arith.constant 2.500000e-01 : f32
    %73 = vector.broadcast %cst_39 : f32 to vector<2x8x8xf32>
    %74 = arith.mulf %72, %73 : vector<2x8x8xf32>
    %75 = vector.broadcast %3 : vector<2x1x8xf32> to vector<2x8x8xf32>
    %76 = arith.addf %74, %75 : vector<2x8x8xf32>
    %cst_40 = arith.constant dense<0xFF800000> : vector<2x8xf32>
    %77 = vector.multi_reduction <maximumf>, %76, %cst_40 [2] : vector<2x8x8xf32> to vector<2x8xf32>
    %78 = vector.shape_cast %77 : vector<2x8xf32> to vector<2x8x1xf32>
    %79 = vector.broadcast %78 : vector<2x8x1xf32> to vector<2x8x8xf32>
    %80 = arith.subf %76, %79 : vector<2x8x8xf32>
    %81 = math.exp %80 : vector<2x8x8xf32>
    %cst_41 = arith.constant dense<0.000000e+00> : vector<2x8xf32>
    %82 = vector.multi_reduction <add>, %81, %cst_41 [2] : vector<2x8x8xf32> to vector<2x8xf32>
    %83 = vector.shape_cast %82 : vector<2x8xf32> to vector<2x8x1xf32>
    %84 = tpu.reciprocal %83 {approx = true} : vector<2x8x1xf32> -> vector<2x8x1xf32>
    %85 = vector.broadcast %84 : vector<2x8x1xf32> to vector<2x8x8xf32>
    %86 = arith.mulf %81, %85 : vector<2x8x8xf32>
    "tpu.trace_start"() <{level = 10 : i32, message = "bqk,bkd->bqd"}> : () -> ()
    %cst_42 = arith.constant dense<0.000000e+00> : vector<2x8x16xf32>
    %87 = tpu.matmul %86, %71, %cst_42 {dimension_numbers = #tpu.dot_dimension_numbers<[2], [1], [1], [2], [0, 0, 0, 1, 1, 2], [0], [0]>} : vector<2x8x8xf32>, vector<2x8x16xf32>, vector<2x8x16xf32> -> vector<2x8x16xf32>
    "tpu.trace_stop"() : () -> ()
    %88 = vector.shape_cast %87 : vector<2x8x16xf32> to vector<16x16xf32>
    %89 = vector.extract_strided_slice %30 {offsets = [0, 0], sizes = [16, 32], strides = [1, 1]} : vector<32x32xf32> to vector<16x32xf32>
    %cst_43 = arith.constant dense<0.000000e+00> : vector<16x32xf32>
    %90 = tpu.matmul %88, %89, %cst_43 {dimension_numbers = #tpu.dot_dimension_numbers<[1], [0], [0], [1], [0, 0, 1, 1], [], []>} : vector<16x16xf32>, vector<16x32xf32>, vector<16x32xf32> -> vector<16x32xf32>
    %91 = arith.addf %65, %90 : vector<16x32xf32>
    %92 = vector.extract_strided_slice %60 {offsets = [0, 16], sizes = [16, 16], strides = [1, 1]} : vector<16x32xf32> to vector<16x16xf32>
    %93 = vector.shape_cast %92 : vector<16x16xf32> to vector<2x8x16xf32>
    %94 = vector.extract_strided_slice %64 {offsets = [0, 16], sizes = [16, 16], strides = [1, 1]} : vector<16x32xf32> to vector<16x16xf32>
    %95 = vector.shape_cast %94 : vector<16x16xf32> to vector<2x8x16xf32>
    %96 = vector.extract_strided_slice %56 {offsets = [0, 16], sizes = [16, 16], strides = [1, 1]} : vector<16x32xf32> to vector<16x16xf32>
    %97 = vector.shape_cast %96 : vector<16x16xf32> to vector<2x8x16xf32>
    "tpu.trace_start"() <{level = 10 : i32, message = "bqd,bkd->bqk"}> : () -> ()
    %cst_44 = arith.constant dense<0.000000e+00> : vector<2x8x8xf32>
    %98 = tpu.matmul %93, %95, %cst_44 {dimension_numbers = #tpu.dot_dimension_numbers<[2], [2], [1], [1], [0, 0, 0, 1, 1, 1], [0], [0]>} : vector<2x8x16xf32>, vector<2x8x16xf32>, vector<2x8x8xf32> -> vector<2x8x8xf32>
    "tpu.trace_stop"() : () -> ()
    %cst_45 = arith.constant 2.500000e-01 : f32
    %99 = vector.broadcast %cst_45 : f32 to vector<2x8x8xf32>
    %100 = arith.mulf %98, %99 : vector<2x8x8xf32>
    %101 = vector.broadcast %3 : vector<2x1x8xf32> to vector<2x8x8xf32>
    %102 = arith.addf %100, %101 : vector<2x8x8xf32>
    %cst_46 = arith.constant dense<0xFF800000> : vector<2x8xf32>
    %103 = vector.multi_reduction <maximumf>, %102, %cst_46 [2] : vector<2x8x8xf32> to vector<2x8xf32>
    %104 = vector.shape_cast %103 : vector<2x8xf32> to vector<2x8x1xf32>
    %105 = vector.broadcast %104 : vector<2x8x1xf32> to vector<2x8x8xf32>
    %106 = arith.subf %102, %105 : vector<2x8x8xf32>
    %107 = math.exp %106 : vector<2x8x8xf32>
    %cst_47 = arith.constant dense<0.000000e+00> : vector<2x8xf32>
    %108 = vector.multi_reduction <add>, %107, %cst_47 [2] : vector<2x8x8xf32> to vector<2x8xf32>
    %109 = vector.shape_cast %108 : vector<2x8xf32> to vector<2x8x1xf32>
    %110 = tpu.reciprocal %109 {approx = true} : vector<2x8x1xf32> -> vector<2x8x1xf32>
    %111 = vector.broadcast %110 : vector<2x8x1xf32> to vector<2x8x8xf32>
    %112 = arith.mulf %107, %111 : vector<2x8x8xf32>
    "tpu.trace_start"() <{level = 10 : i32, message = "bqk,bkd->bqd"}> : () -> ()
    %cst_48 = arith.constant dense<0.000000e+00> : vector<2x8x16xf32>
    %113 = tpu.matmul %112, %97, %cst_48 {dimension_numbers = #tpu.dot_dimension_numbers<[2], [1], [1], [2], [0, 0, 0, 1, 1, 2], [0], [0]>} : vector<2x8x8xf32>, vector<2x8x16xf32>, vector<2x8x16xf32> -> vector<2x8x16xf32>
    "tpu.trace_stop"() : () -> ()
    %114 = vector.shape_cast %113 : vector<2x8x16xf32> to vector<16x16xf32>
    %115 = vector.extract_strided_slice %30 {offsets = [16, 0], sizes = [16, 32], strides = [1, 1]} : vector<32x32xf32> to vector<16x32xf32>
    %cst_49 = arith.constant dense<0.000000e+00> : vector<16x32xf32>
    %116 = tpu.matmul %114, %115, %cst_49 {dimension_numbers = #tpu.dot_dimension_numbers<[1], [0], [0], [1], [0, 0, 1, 1], [], []>} : vector<16x16xf32>, vector<16x32xf32>, vector<16x32xf32> -> vector<16x32xf32>
    %117 = arith.addf %91, %116 : vector<16x32xf32>
    %118 = arith.addf %26, %117 : vector<16x32xf32>
    %cst_50 = arith.constant dense<0.000000e+00> : vector<16xf32>
    %119 = vector.multi_reduction <add>, %118, %cst_50 [1] : vector<16x32xf32> to vector<16xf32>
    %120 = vector.shape_cast %119 : vector<16xf32> to vector<16x1xf32>
    %cst_51 = arith.constant 3.200000e+01 : f32
    %121 = vector.broadcast %cst_51 : f32 to vector<16x1xf32>
    %122 = arith.divf %120, %121 : vector<16x1xf32>
    %123 = vector.broadcast %122 : vector<16x1xf32> to vector<16x32xf32>
    %124 = arith.subf %118, %123 : vector<16x32xf32>
    %125 = arith.mulf %124, %124 : vector<16x32xf32>
    %cst_52 = arith.constant dense<0.000000e+00> : vector<16xf32>
    %126 = vector.multi_reduction <add>, %125, %cst_52 [1] : vector<16x32xf32> to vector<16xf32>
    %127 = vector.shape_cast %126 : vector<16xf32> to vector<16x1xf32>
    %cst_53 = arith.constant 3.200000e+01 : f32
    %128 = vector.broadcast %cst_53 : f32 to vector<16x1xf32>
    %129 = arith.divf %127, %128 : vector<16x1xf32>
    %130 = vector.broadcast %122 : vector<16x1xf32> to vector<16x32xf32>
    %131 = arith.subf %118, %130 : vector<16x32xf32>
    %cst_54 = arith.constant 9.99999974E-6 : f32
    %132 = vector.broadcast %cst_54 : f32 to vector<16x1xf32>
    %133 = arith.addf %129, %132 : vector<16x1xf32>
    %134 = math.rsqrt %133 : vector<16x1xf32>
    %135 = vector.broadcast %134 : vector<16x1xf32> to vector<16x32xf32>
    %136 = arith.mulf %131, %135 : vector<16x32xf32>
    %cst_55 = arith.constant dense<0.000000e+00> : vector<16x96xf32>
    %137 = tpu.matmul %136, %32, %cst_55 {dimension_numbers = #tpu.dot_dimension_numbers<[1], [0], [0], [1], [0, 0, 1, 1], [], []>} : vector<16x32xf32>, vector<32x96xf32>, vector<16x96xf32> -> vector<16x96xf32>
    %138 = vector.extract_strided_slice %137 {offsets = [0, 0], sizes = [16, 48], strides = [1, 1]} : vector<16x96xf32> to vector<16x48xf32>
    %139 = arith.mulf %138, %138 : vector<16x48xf32>
    %140 = arith.mulf %138, %139 : vector<16x48xf32>
    %cst_56 = arith.constant 4.471500e-02 : f32
    %141 = vector.broadcast %cst_56 : f32 to vector<16x48xf32>
    %142 = arith.mulf %141, %140 : vector<16x48xf32>
    %143 = arith.addf %138, %142 : vector<16x48xf32>
    %cst_57 = arith.constant 0.797884583 : f32
    %144 = vector.broadcast %cst_57 : f32 to vector<16x48xf32>
    %145 = arith.mulf %144, %143 : vector<16x48xf32>
    %146 = math.tanh %145 : vector<16x48xf32>
    %cst_58 = arith.constant 1.000000e+00 : f32
    %147 = vector.broadcast %cst_58 : f32 to vector<16x48xf32>
    %148 = arith.addf %147, %146 : vector<16x48xf32>
    %cst_59 = arith.constant 5.000000e-01 : f32
    %149 = vector.broadcast %cst_59 : f32 to vector<16x48xf32>
    %150 = arith.mulf %149, %148 : vector<16x48xf32>
    %151 = arith.mulf %138, %150 : vector<16x48xf32>
    %152 = vector.extract_strided_slice %137 {offsets = [0, 48], sizes = [16, 48], strides = [1, 1]} : vector<16x96xf32> to vector<16x48xf32>
    %153 = arith.mulf %151, %152 : vector<16x48xf32>
    %cst_60 = arith.constant dense<0.000000e+00> : vector<16x32xf32>
    %154 = tpu.matmul %153, %34, %cst_60 {dimension_numbers = #tpu.dot_dimension_numbers<[1], [0], [0], [1], [0, 0, 1, 1], [], []>} : vector<16x48xf32>, vector<48x32xf32>, vector<16x32xf32> -> vector<16x32xf32>
    %155 = arith.addf %118, %154 : vector<16x32xf32>
    %c1 = arith.constant 1 : index
    %c0_61 = arith.constant 0 : index
    %c0_62 = arith.constant 0 : index
    %156 = vector.load %arg6[%c1, %c0_61, %c0_62] : memref<2x32x96xf32, #tpu.memory_space<vmem>>, vector<1x32x96xf32>
    %157 = vector.shape_cast %156 : vector<1x32x96xf32> to vector<32x96xf32>
    %c1_63 = arith.constant 1 : index
    %c0_64 = arith.constant 0 : index
    %c0_65 = arith.constant 0 : index
    %158 = vector.load %arg7[%c1_63, %c0_64, %c0_65] : memref<2x32x32xf32, #tpu.memory_space<vmem>>, vector<1x32x32xf32>
    %159 = vector.shape_cast %158 : vector<1x32x32xf32> to vector<32x32xf32>
    %c1_66 = arith.constant 1 : index
    %c0_67 = arith.constant 0 : index
    %c0_68 = arith.constant 0 : index
    %160 = vector.load %arg8[%c1_66, %c0_67, %c0_68] : memref<2x32x96xf32, #tpu.memory_space<vmem>>, vector<1x32x96xf32>
    %161 = vector.shape_cast %160 : vector<1x32x96xf32> to vector<32x96xf32>
    %c1_69 = arith.constant 1 : index
    %c0_70 = arith.constant 0 : index
    %c0_71 = arith.constant 0 : index
    %162 = vector.load %arg9[%c1_69, %c0_70, %c0_71] : memref<2x48x32xf32, #tpu.memory_space<vmem>>, vector<1x48x32xf32>
    %163 = vector.shape_cast %162 : vector<1x48x32xf32> to vector<48x32xf32>
    %cst_72 = arith.constant dense<0.000000e+00> : vector<16xf32>
    %164 = vector.multi_reduction <add>, %155, %cst_72 [1] : vector<16x32xf32> to vector<16xf32>
    %165 = vector.shape_cast %164 : vector<16xf32> to vector<16x1xf32>
    %cst_73 = arith.constant 3.200000e+01 : f32
    %166 = vector.broadcast %cst_73 : f32 to vector<16x1xf32>
    %167 = arith.divf %165, %166 : vector<16x1xf32>
    %168 = vector.broadcast %167 : vector<16x1xf32> to vector<16x32xf32>
    %169 = arith.subf %155, %168 : vector<16x32xf32>
    %170 = arith.mulf %169, %169 : vector<16x32xf32>
    %cst_74 = arith.constant dense<0.000000e+00> : vector<16xf32>
    %171 = vector.multi_reduction <add>, %170, %cst_74 [1] : vector<16x32xf32> to vector<16xf32>
    %172 = vector.shape_cast %171 : vector<16xf32> to vector<16x1xf32>
    %cst_75 = arith.constant 3.200000e+01 : f32
    %173 = vector.broadcast %cst_75 : f32 to vector<16x1xf32>
    %174 = arith.divf %172, %173 : vector<16x1xf32>
    %175 = vector.broadcast %167 : vector<16x1xf32> to vector<16x32xf32>
    %176 = arith.subf %155, %175 : vector<16x32xf32>
    %cst_76 = arith.constant 9.99999974E-6 : f32
    %177 = vector.broadcast %cst_76 : f32 to vector<16x1xf32>
    %178 = arith.addf %174, %177 : vector<16x1xf32>
    %179 = math.rsqrt %178 : vector<16x1xf32>
    %180 = vector.broadcast %179 : vector<16x1xf32> to vector<16x32xf32>
    %181 = arith.mulf %176, %180 : vector<16x32xf32>
    %cst_77 = arith.constant dense<0.000000e+00> : vector<16x96xf32>
    %182 = tpu.matmul %181, %157, %cst_77 {dimension_numbers = #tpu.dot_dimension_numbers<[1], [0], [0], [1], [0, 0, 1, 1], [], []>} : vector<16x32xf32>, vector<32x96xf32>, vector<16x96xf32> -> vector<16x96xf32>
    %183 = vector.extract_strided_slice %182 {offsets = [0, 0], sizes = [16, 32], strides = [1, 1]} : vector<16x96xf32> to vector<16x32xf32>
    %184 = vector.extract_strided_slice %182 {offsets = [0, 32], sizes = [16, 32], strides = [1, 1]} : vector<16x96xf32> to vector<16x32xf32>
    %185 = vector.extract_strided_slice %182 {offsets = [0, 64], sizes = [16, 32], strides = [1, 1]} : vector<16x96xf32> to vector<16x32xf32>
    %186 = arith.mulf %183, %0 : vector<16x32xf32>
    %cst_78 = arith.constant dense<0.000000e+00> : vector<16x32xf32>
    %187 = tpu.matmul %183, %2, %cst_78 {dimension_numbers = #tpu.dot_dimension_numbers<[1], [0], [0], [1], [0, 0, 1, 1], [], []>} : vector<16x32xf32>, vector<32x32xf32>, vector<16x32xf32> -> vector<16x32xf32>
    %188 = arith.mulf %187, %1 : vector<16x32xf32>
    %189 = arith.addf %186, %188 : vector<16x32xf32>
    %190 = arith.mulf %184, %0 : vector<16x32xf32>
    %cst_79 = arith.constant dense<0.000000e+00> : vector<16x32xf32>
    %191 = tpu.matmul %184, %2, %cst_79 {dimension_numbers = #tpu.dot_dimension_numbers<[1], [0], [0], [1], [0, 0, 1, 1], [], []>} : vector<16x32xf32>, vector<32x32xf32>, vector<16x32xf32> -> vector<16x32xf32>
    %192 = arith.mulf %191, %1 : vector<16x32xf32>
    %193 = arith.addf %190, %192 : vector<16x32xf32>
    %cst_80 = arith.constant 0.000000e+00 : f32
    %194 = vector.broadcast %cst_80 : f32 to vector<16x32xf32>
    %195 = vector.extract_strided_slice %189 {offsets = [0, 0], sizes = [16, 16], strides = [1, 1]} : vector<16x32xf32> to vector<16x16xf32>
    %196 = vector.shape_cast %195 : vector<16x16xf32> to vector<2x8x16xf32>
    %197 = vector.extract_strided_slice %193 {offsets = [0, 0], sizes = [16, 16], strides = [1, 1]} : vector<16x32xf32> to vector<16x16xf32>
    %198 = vector.shape_cast %197 : vector<16x16xf32> to vector<2x8x16xf32>
    %199 = vector.extract_strided_slice %185 {offsets = [0, 0], sizes = [16, 16], strides = [1, 1]} : vector<16x32xf32> to vector<16x16xf32>
    %200 = vector.shape_cast %199 : vector<16x16xf32> to vector<2x8x16xf32>
    "tpu.trace_start"() <{level = 10 : i32, message = "bqd,bkd->bqk"}> : () -> ()
    %cst_81 = arith.constant dense<0.000000e+00> : vector<2x8x8xf32>
    %201 = tpu.matmul %196, %198, %cst_81 {dimension_numbers = #tpu.dot_dimension_numbers<[2], [2], [1], [1], [0, 0, 0, 1, 1, 1], [0], [0]>} : vector<2x8x16xf32>, vector<2x8x16xf32>, vector<2x8x8xf32> -> vector<2x8x8xf32>
    "tpu.trace_stop"() : () -> ()
    %cst_82 = arith.constant 2.500000e-01 : f32
    %202 = vector.broadcast %cst_82 : f32 to vector<2x8x8xf32>
    %203 = arith.mulf %201, %202 : vector<2x8x8xf32>
    %204 = vector.broadcast %3 : vector<2x1x8xf32> to vector<2x8x8xf32>
    %205 = arith.addf %203, %204 : vector<2x8x8xf32>
    %cst_83 = arith.constant dense<0xFF800000> : vector<2x8xf32>
    %206 = vector.multi_reduction <maximumf>, %205, %cst_83 [2] : vector<2x8x8xf32> to vector<2x8xf32>
    %207 = vector.shape_cast %206 : vector<2x8xf32> to vector<2x8x1xf32>
    %208 = vector.broadcast %207 : vector<2x8x1xf32> to vector<2x8x8xf32>
    %209 = arith.subf %205, %208 : vector<2x8x8xf32>
    %210 = math.exp %209 : vector<2x8x8xf32>
    %cst_84 = arith.constant dense<0.000000e+00> : vector<2x8xf32>
    %211 = vector.multi_reduction <add>, %210, %cst_84 [2] : vector<2x8x8xf32> to vector<2x8xf32>
    %212 = vector.shape_cast %211 : vector<2x8xf32> to vector<2x8x1xf32>
    %213 = tpu.reciprocal %212 {approx = true} : vector<2x8x1xf32> -> vector<2x8x1xf32>
    %214 = vector.broadcast %213 : vector<2x8x1xf32> to vector<2x8x8xf32>
    %215 = arith.mulf %210, %214 : vector<2x8x8xf32>
    "tpu.trace_start"() <{level = 10 : i32, message = "bqk,bkd->bqd"}> : () -> ()
    %cst_85 = arith.constant dense<0.000000e+00> : vector<2x8x16xf32>
    %216 = tpu.matmul %215, %200, %cst_85 {dimension_numbers = #tpu.dot_dimension_numbers<[2], [1], [1], [2], [0, 0, 0, 1, 1, 2], [0], [0]>} : vector<2x8x8xf32>, vector<2x8x16xf32>, vector<2x8x16xf32> -> vector<2x8x16xf32>
    "tpu.trace_stop"() : () -> ()
    %217 = vector.shape_cast %216 : vector<2x8x16xf32> to vector<16x16xf32>
    %218 = vector.extract_strided_slice %159 {offsets = [0, 0], sizes = [16, 32], strides = [1, 1]} : vector<32x32xf32> to vector<16x32xf32>
    %cst_86 = arith.constant dense<0.000000e+00> : vector<16x32xf32>
    %219 = tpu.matmul %217, %218, %cst_86 {dimension_numbers = #tpu.dot_dimension_numbers<[1], [0], [0], [1], [0, 0, 1, 1], [], []>} : vector<16x16xf32>, vector<16x32xf32>, vector<16x32xf32> -> vector<16x32xf32>
    %220 = arith.addf %194, %219 : vector<16x32xf32>
    %221 = vector.extract_strided_slice %189 {offsets = [0, 16], sizes = [16, 16], strides = [1, 1]} : vector<16x32xf32> to vector<16x16xf32>
    %222 = vector.shape_cast %221 : vector<16x16xf32> to vector<2x8x16xf32>
    %223 = vector.extract_strided_slice %193 {offsets = [0, 16], sizes = [16, 16], strides = [1, 1]} : vector<16x32xf32> to vector<16x16xf32>
    %224 = vector.shape_cast %223 : vector<16x16xf32> to vector<2x8x16xf32>
    %225 = vector.extract_strided_slice %185 {offsets = [0, 16], sizes = [16, 16], strides = [1, 1]} : vector<16x32xf32> to vector<16x16xf32>
    %226 = vector.shape_cast %225 : vector<16x16xf32> to vector<2x8x16xf32>
    "tpu.trace_start"() <{level = 10 : i32, message = "bqd,bkd->bqk"}> : () -> ()
    %cst_87 = arith.constant dense<0.000000e+00> : vector<2x8x8xf32>
    %227 = tpu.matmul %222, %224, %cst_87 {dimension_numbers = #tpu.dot_dimension_numbers<[2], [2], [1], [1], [0, 0, 0, 1, 1, 1], [0], [0]>} : vector<2x8x16xf32>, vector<2x8x16xf32>, vector<2x8x8xf32> -> vector<2x8x8xf32>
    "tpu.trace_stop"() : () -> ()
    %cst_88 = arith.constant 2.500000e-01 : f32
    %228 = vector.broadcast %cst_88 : f32 to vector<2x8x8xf32>
    %229 = arith.mulf %227, %228 : vector<2x8x8xf32>
    %230 = vector.broadcast %3 : vector<2x1x8xf32> to vector<2x8x8xf32>
    %231 = arith.addf %229, %230 : vector<2x8x8xf32>
    %cst_89 = arith.constant dense<0xFF800000> : vector<2x8xf32>
    %232 = vector.multi_reduction <maximumf>, %231, %cst_89 [2] : vector<2x8x8xf32> to vector<2x8xf32>
    %233 = vector.shape_cast %232 : vector<2x8xf32> to vector<2x8x1xf32>
    %234 = vector.broadcast %233 : vector<2x8x1xf32> to vector<2x8x8xf32>
    %235 = arith.subf %231, %234 : vector<2x8x8xf32>
    %236 = math.exp %235 : vector<2x8x8xf32>
    %cst_90 = arith.constant dense<0.000000e+00> : vector<2x8xf32>
    %237 = vector.multi_reduction <add>, %236, %cst_90 [2] : vector<2x8x8xf32> to vector<2x8xf32>
    %238 = vector.shape_cast %237 : vector<2x8xf32> to vector<2x8x1xf32>
    %239 = tpu.reciprocal %238 {approx = true} : vector<2x8x1xf32> -> vector<2x8x1xf32>
    %240 = vector.broadcast %239 : vector<2x8x1xf32> to vector<2x8x8xf32>
    %241 = arith.mulf %236, %240 : vector<2x8x8xf32>
    "tpu.trace_start"() <{level = 10 : i32, message = "bqk,bkd->bqd"}> : () -> ()
    %cst_91 = arith.constant dense<0.000000e+00> : vector<2x8x16xf32>
    %242 = tpu.matmul %241, %226, %cst_91 {dimension_numbers = #tpu.dot_dimension_numbers<[2], [1], [1], [2], [0, 0, 0, 1, 1, 2], [0], [0]>} : vector<2x8x8xf32>, vector<2x8x16xf32>, vector<2x8x16xf32> -> vector<2x8x16xf32>
    "tpu.trace_stop"() : () -> ()
    %243 = vector.shape_cast %242 : vector<2x8x16xf32> to vector<16x16xf32>
    %244 = vector.extract_strided_slice %159 {offsets = [16, 0], sizes = [16, 32], strides = [1, 1]} : vector<32x32xf32> to vector<16x32xf32>
    %cst_92 = arith.constant dense<0.000000e+00> : vector<16x32xf32>
    %245 = tpu.matmul %243, %244, %cst_92 {dimension_numbers = #tpu.dot_dimension_numbers<[1], [0], [0], [1], [0, 0, 1, 1], [], []>} : vector<16x16xf32>, vector<16x32xf32>, vector<16x32xf32> -> vector<16x32xf32>
    %246 = arith.addf %220, %245 : vector<16x32xf32>
    %247 = arith.addf %155, %246 : vector<16x32xf32>
    %cst_93 = arith.constant dense<0.000000e+00> : vector<16xf32>
    %248 = vector.multi_reduction <add>, %247, %cst_93 [1] : vector<16x32xf32> to vector<16xf32>
    %249 = vector.shape_cast %248 : vector<16xf32> to vector<16x1xf32>
    %cst_94 = arith.constant 3.200000e+01 : f32
    %250 = vector.broadcast %cst_94 : f32 to vector<16x1xf32>
    %251 = arith.divf %249, %250 : vector<16x1xf32>
    %252 = vector.broadcast %251 : vector<16x1xf32> to vector<16x32xf32>
    %253 = arith.subf %247, %252 : vector<16x32xf32>
    %254 = arith.mulf %253, %253 : vector<16x32xf32>
    %cst_95 = arith.constant dense<0.000000e+00> : vector<16xf32>
    %255 = vector.multi_reduction <add>, %254, %cst_95 [1] : vector<16x32xf32> to vector<16xf32>
    %256 = vector.shape_cast %255 : vector<16xf32> to vector<16x1xf32>
    %cst_96 = arith.constant 3.200000e+01 : f32
    %257 = vector.broadcast %cst_96 : f32 to vector<16x1xf32>
    %258 = arith.divf %256, %257 : vector<16x1xf32>
    %259 = vector.broadcast %251 : vector<16x1xf32> to vector<16x32xf32>
    %260 = arith.subf %247, %259 : vector<16x32xf32>
    %cst_97 = arith.constant 9.99999974E-6 : f32
    %261 = vector.broadcast %cst_97 : f32 to vector<16x1xf32>
    %262 = arith.addf %258, %261 : vector<16x1xf32>
    %263 = math.rsqrt %262 : vector<16x1xf32>
    %264 = vector.broadcast %263 : vector<16x1xf32> to vector<16x32xf32>
    %265 = arith.mulf %260, %264 : vector<16x32xf32>
    %cst_98 = arith.constant dense<0.000000e+00> : vector<16x96xf32>
    %266 = tpu.matmul %265, %161, %cst_98 {dimension_numbers = #tpu.dot_dimension_numbers<[1], [0], [0], [1], [0, 0, 1, 1], [], []>} : vector<16x32xf32>, vector<32x96xf32>, vector<16x96xf32> -> vector<16x96xf32>
    %267 = vector.extract_strided_slice %266 {offsets = [0, 0], sizes = [16, 48], strides = [1, 1]} : vector<16x96xf32> to vector<16x48xf32>
    %268 = arith.mulf %267, %267 : vector<16x48xf32>
    %269 = arith.mulf %267, %268 : vector<16x48xf32>
    %cst_99 = arith.constant 4.471500e-02 : f32
    %270 = vector.broadcast %cst_99 : f32 to vector<16x48xf32>
    %271 = arith.mulf %270, %269 : vector<16x48xf32>
    %272 = arith.addf %267, %271 : vector<16x48xf32>
    %cst_100 = arith.constant 0.797884583 : f32
    %273 = vector.broadcast %cst_100 : f32 to vector<16x48xf32>
    %274 = arith.mulf %273, %272 : vector<16x48xf32>
    %275 = math.tanh %274 : vector<16x48xf32>
    %cst_101 = arith.constant 1.000000e+00 : f32
    %276 = vector.broadcast %cst_101 : f32 to vector<16x48xf32>
    %277 = arith.addf %276, %275 : vector<16x48xf32>
    %cst_102 = arith.constant 5.000000e-01 : f32
    %278 = vector.broadcast %cst_102 : f32 to vector<16x48xf32>
    %279 = arith.mulf %278, %277 : vector<16x48xf32>
    %280 = arith.mulf %267, %279 : vector<16x48xf32>
    %281 = vector.extract_strided_slice %266 {offsets = [0, 48], sizes = [16, 48], strides = [1, 1]} : vector<16x96xf32> to vector<16x48xf32>
    %282 = arith.mulf %280, %281 : vector<16x48xf32>
    %cst_103 = arith.constant dense<0.000000e+00> : vector<16x32xf32>
    %283 = tpu.matmul %282, %163, %cst_103 {dimension_numbers = #tpu.dot_dimension_numbers<[1], [0], [0], [1], [0, 0, 1, 1], [], []>} : vector<16x48xf32>, vector<48x32xf32>, vector<16x32xf32> -> vector<16x32xf32>
    %284 = arith.addf %247, %283 : vector<16x32xf32>
    %285 = vector.shape_cast %284 : vector<16x32xf32> to vector<2x8x32xf32>
    %286 = vector.extract_strided_slice %285 {offsets = [0, 0, 0], sizes = [2, 1, 32], strides = [1, 1, 1]} : vector<2x8x32xf32> to vector<2x1x32xf32>
    %287 = vector.shape_cast %286 : vector<2x1x32xf32> to vector<2x32xf32>
    %cst_104 = arith.constant dense<0.000000e+00> : vector<2xf32>
    %288 = vector.multi_reduction <add>, %287, %cst_104 [1] : vector<2x32xf32> to vector<2xf32>
    %289 = vector.shape_cast %288 : vector<2xf32> to vector<2x1xf32>
    %cst_105 = arith.constant 3.200000e+01 : f32
    %290 = vector.broadcast %cst_105 : f32 to vector<2x1xf32>
    %291 = arith.divf %289, %290 : vector<2x1xf32>
    %292 = vector.broadcast %291 : vector<2x1xf32> to vector<2x32xf32>
    %293 = arith.subf %287, %292 : vector<2x32xf32>
    %294 = arith.mulf %293, %293 : vector<2x32xf32>
    %cst_106 = arith.constant dense<0.000000e+00> : vector<2xf32>
    %295 = vector.multi_reduction <add>, %294, %cst_106 [1] : vector<2x32xf32> to vector<2xf32>
    %296 = vector.shape_cast %295 : vector<2xf32> to vector<2x1xf32>
    %cst_107 = arith.constant 3.200000e+01 : f32
    %297 = vector.broadcast %cst_107 : f32 to vector<2x1xf32>
    %298 = arith.divf %296, %297 : vector<2x1xf32>
    %299 = vector.broadcast %291 : vector<2x1xf32> to vector<2x32xf32>
    %300 = arith.subf %287, %299 : vector<2x32xf32>
    %cst_108 = arith.constant 9.99999974E-6 : f32
    %301 = vector.broadcast %cst_108 : f32 to vector<2x1xf32>
    %302 = arith.addf %298, %301 : vector<2x1xf32>
    %303 = math.rsqrt %302 : vector<2x1xf32>
    %304 = vector.broadcast %303 : vector<2x1xf32> to vector<2x32xf32>
    %305 = arith.mulf %300, %304 : vector<2x32xf32>
    %c0_109 = arith.constant 0 : index
    %c0_110 = arith.constant 0 : index
    %306 = vector.load %arg10[%c0_109, %c0_110] : memref<32x128xf32, #tpu.memory_space<vmem>>, vector<32x128xf32>
    %cst_111 = arith.constant dense<0.000000e+00> : vector<2x128xf32>
    %307 = tpu.matmul %305, %306, %cst_111 {dimension_numbers = #tpu.dot_dimension_numbers<[1], [0], [0], [1], [0, 0, 1, 1], [], []>} : vector<2x32xf32>, vector<32x128xf32>, vector<2x128xf32> -> vector<2x128xf32>
    %c0_112 = arith.constant 0 : index
    %c0_113 = arith.constant 0 : index
    %308 = vector.load %arg11[%c0_112, %c0_113] : memref<1x128xf32, #tpu.memory_space<vmem>>, vector<1x128xf32>
    %309 = vector.broadcast %308 : vector<1x128xf32> to vector<2x128xf32>
    %310 = arith.addf %307, %309 : vector<2x128xf32>
    %c0_114 = arith.constant 0 : index
    %c0_115 = arith.constant 0 : index
    %311 = vector.load %arg12[%c0_114, %c0_115] : memref<2x128xf32, #tpu.memory_space<vmem>>, vector<2x128xf32>
    tpu.vector_store %arg12[%c0_114, %c0_115], %310 {strides = array<i32>} : memref<2x128xf32, #tpu.memory_space<vmem>>, vector<2x128xf32>,
    return
  }
}

</mosaic_0001>

<bundles_post_ra>
// kernel: tpu_custom_call.1
= control target key start
LH: loop header
LB: loop body
LE: loop exit
PB: predicated region body
PF: predicated region fallthrough
CT: control target
= control target key end

     0   :  { %17 = vsyncpa [#allocation3], 0  ;;  %s4272_s0 = inlined_call_operand.hbm [shape: f32[2,8,32], index: 0, kind: input, shape index: {}]   ;;  %s4273_s1 = inlined_call_operand.hbm [shape: f32[2,1,8], index: 1, kind: input, shape index: {}]   ;;  %s4274_s2 = inlined_call_operand.hbm [shape: f32[16,32], index: 2, kind: input, shape index: {}]   ;;  %s4275_s3 = inlined_call_operand.hbm [shape: f32[16,32], index: 3, kind: input, shape index: {}]   ;;  %s4276_s4 = inlined_call_operand.vmem [shape: f32[32,32], index: 4, kind: input, shape index: {}]   ;;  %s4277_s5 = inlined_call_operand.vmem [shape: f32[1,32], index: 5, kind: input, shape index: {}]   ;;  %s4278_s6 = inlined_call_operand.vmem [shape: f32[2,32,96], index: 6, kind: input, shape index: {}]   ;;  %s4279_s7 = inlined_call_operand.vmem [shape: f32[2,32,32], index: 7, kind: input, shape index: {}]   ;;  %s4280_s8 = inlined_call_operand.hbm [shape: f32[2,32,96], index: 8, kind: input, shape index: {}]   ;;  %s4281_s9 = inlined_call_operand.vmem [shape: f32[2,48,32], index: 9, kind: input, shape index: {}]   ;;  %s4282_s10 = inlined_call_operand.hbm [shape: f32[32,128], index: 10, kind: input, shape index: {}]   ;;  %s4283_s11 = inlined_call_operand.vmem [shape: f32[1,128], index: 11, kind: input, shape index: {}]   ;;  %s4284_s12 = inlined_call_operand.hbm [shape: f32[2,128], index: 12, kind: output, shape index: {}]  }
   0x1   :  { %18 = vsyncpa [#allocation6], 0 }
   0x2   :  { %19 = vsyncpa [#allocation9], 0 }
   0x3   :  { %20 = vsyncpa [#allocation12], 0 }
   0x4   :  { %21 = vsyncpa [#allocation4], 0  ;;  %s3716_s21 = smov [#allocation5]  }
   0x5   :  { %s39_s22 = sshll.u32 %s3716_s21, 4  ;;  %s40_s22 = int_to_ptr.vmem [resolvable:$true] %s39_s22 }
   0x6   :  { %s3574_s23 = scalar_lea.vmem %s40_s22, 32  ;;  %p3579_p1 = scmp.lt.s32.totalorder %s40_s22, %s40_s22 }
   0x7   :  { %p3575_p0 = scmp.ne.s32.totalorder %s40_s22, %s3574_s23  ;;  %p3580_p2 = scmp.lt.s32.totalorder %s3574_s23, %s3574_s23 }
   0x9   :  { %p3581_p3 = por %p3580_p2, %p3579_p1 }
   0xb   :  { %p3582_p4 = pnand %p3581_p3, %p3575_p0 }
   0xd   :  { %3585 = shalt.err (!%p3582_p4)
}
   0xe   :  { %s3717_s24 = smov 16   ;;  %s3718_s25 = smov 1  }
   0xf   :  { %45 = dma.hbm_to_vmem [thread:$0]  %s4273_s1, 32, %s40_s22, [#allocation6], %s3717_s24, %s3717_s24, %s3718_s25  }
  0x10   :  { %s3719_s28 = smov [#allocation8]   ;;  %s3720_s30 = smov [#allocation2]  }
  0x11   :  { %s63_s29 = sshll.u32 %s3719_s28, 4  ;;  %s27_s13 = sshll.u32 %s3720_s30, 4  ;;  %s64_s29 = int_to_ptr.vmem [resolvable:$true] %s63_s29  ;;  %s28_s13 = int_to_ptr.vmem [resolvable:$true] %s27_s13 }
  0x12   :  { %s3594_s14 = scalar_lea.vmem %s64_s29, 256  ;;  %p3599_p6 = scmp.lt.s32.totalorder %s64_s29, %s64_s29 }
  0x13   :  { %p3595_p5 = scmp.ne.s32.totalorder %s64_s29, %s3594_s14  ;;  %p3600_p7 = scmp.lt.s32.totalorder %s3594_s14, %s3594_s14 }
  0x15   :  { %p3601_p8 = por %p3600_p7, %p3599_p6 }
  0x17   :  { %p3602_p9 = pnand %p3601_p8, %p3595_p5 }
  0x19   :  { %3605 = shalt.err (!%p3602_p9)
}
  0x1a   :  { %s3721_s15 = smov 128   ;;  %s3722_s16 = smov 8  }
  0x1b   :  { %69 = dma.hbm_to_vmem [thread:$0]  %s4275_s3, 256, %s64_s29, [#allocation9], %s3721_s15, %s3721_s15, %s3722_s16  }
  0x1c   :  { %s3614_s1 = scalar_lea.vmem %s28_s13, 256  ;;  %p3619_p11 = scmp.lt.s32.totalorder %s28_s13, %s28_s13 }
  0x1d   :  { %p3615_p10 = scmp.ne.s32.totalorder %s28_s13, %s3614_s1  ;;  %p3620_p12 = scmp.lt.s32.totalorder %s3614_s1, %s3614_s1 }
  0x1f   :  { %p3621_p13 = por %p3620_p12, %p3619_p11 }
  0x21   :  { %p3622_p0 = pnand %p3621_p13, %p3615_p10 }
  0x23   :  { %3625 = shalt.err (!%p3622_p0)
}
  0x24   :  { %33 = dma.hbm_to_vmem [thread:$0]  %s4272_s0, 256, %s28_s13, [#allocation3], %s3721_s15, %s3721_s15, %s3722_s16  }
  0x25   :  { %s3723_s21 = smov [#allocation7]   ;;  %s3724_s23 = smov [#allocation10]  }
  0x26   :  { %s51_s22 = sshll.u32 %s3723_s21, 4  ;;  %s83_s3 = sshll.u32 %s3724_s23, 4  ;;  %s52_s22 = int_to_ptr.vmem [resolvable:$true] %s51_s22  ;;  %s84_s3 = int_to_ptr.vmem [resolvable:$true] %s83_s3 }
  0x27   :  { %s3634_s24 = scalar_lea.vmem %s52_s22, 256  ;;  %p3639_p2 = scmp.lt.s32.totalorder %s52_s22, %s52_s22 }
  0x28   :  { %p3635_p1 = scmp.ne.s32.totalorder %s52_s22, %s3634_s24  ;;  %p3640_p3 = scmp.lt.s32.totalorder %s3634_s24, %s3634_s24 }
  0x2a   :  { %p3641_p4 = por %p3640_p3, %p3639_p2 }
  0x2c   :  { %p3642_p5 = pnand %p3641_p4, %p3635_p1 }
  0x2e   :  { %3645 = shalt.err (!%p3642_p5)
}
  0x2f   :  { %57 = dma.hbm_to_vmem [thread:$0]  %s4274_s2, 256, %s52_s22, [#allocation6], %s3721_s15, %s3721_s15, %s3722_s16  }
  0x30   :  { %s3654_s0 = scalar_lea.vmem %s84_s3, 1024  ;;  %p3659_p7 = scmp.lt.s32.totalorder %s84_s3, %s84_s3 }
  0x31   :  { %p3655_p6 = scmp.ne.s32.totalorder %s84_s3, %s3654_s0  ;;  %p3660_p8 = scmp.lt.s32.totalorder %s3654_s0, %s3654_s0 }
  0x33   :  { %p3661_p9 = por %p3660_p8, %p3659_p7 }
  0x35   :  { %p3662_p10 = pnand %p3661_p9, %p3655_p6 }
  0x37   :  { %3665 = shalt.err (!%p3662_p10)
}
  0x38   :  { %89 = dma.hbm_to_vmem [thread:$0]  %s4280_s8, 1024, %s84_s3, [#allocation9], %s3721_s15, %s3721_s15, %s3722_s16  }
  0x39   :  { %s3725_s29 = smov [#allocation11]  }
  0x3a   :  { %s97_s30 = sshll.u32 %s3725_s29, 4  ;;  %s98_s30 = int_to_ptr.vmem [resolvable:$true] %s97_s30 }
  0x3b   :  { %s3674_s13 = scalar_lea.vmem %s98_s30, 512  ;;  %p3679_p12 = scmp.lt.s32.totalorder %s98_s30, %s98_s30 }
  0x3c   :  { %p3675_p11 = scmp.ne.s32.totalorder %s98_s30, %s3674_s13  ;;  %p3680_p13 = scmp.lt.s32.totalorder %s3674_s13, %s3674_s13 }
  0x3e   :  { %p3681_p0 = por %p3680_p13, %p3679_p12 }
  0x40   :  { %p3682_p1 = pnand %p3681_p0, %p3675_p11 }
  0x42   :  { %3685 = shalt.err (!%p3682_p1)
}
  0x43   :  { %103 = dma.hbm_to_vmem [thread:$0]  %s4282_s10, 512, %s98_s30, [#allocation12], %s3721_s15, %s3721_s15, %s3722_s16  }
  0x44   :  { %3706 = dma.done.wait [#allocation3], 256  }
  0x45   :  { %3707 = vsyncadd [#allocation3], 4294967040 }
  0x46   :  { %3708 = dma.done.wait [#allocation6], 288  }
  0x47   :  { %3709 = vsyncadd [#allocation6], 4294967008 }
  0x48   :  { %3710 = dma.done.wait [#allocation9], 1280  }
  0x49   :  { %3711 = vsyncadd [#allocation9], 4294966016 }
  0x4a   :  { %3712 = dma.done.wait [#allocation12], 512  }
  0x4b   :  { %3713 = vsyncadd [#allocation12], 4294966784  ;;  %vm136_vm0 = vcmask 261120   ;;  %v134_v0 = vld [vmem:[#allocation2] sm:$0xff]  ;;  %v135_v1 = vld [vmem:[#allocation2 + $0x8] sm:$0xff]  ;;  %s3726_s27 = smov 96  }
  0x4c   :  { %v137_v2 = vsel %vm136_vm0, %v134_v0, 0.0  ;;  %v140_v3 = vsel %vm136_vm0, %v135_v1, 0.0  ;;  %v3060_v21 = vld [vmem:[%s4277_s5] ss:$0 sm:$0xff]  ;;  %v176_v39 = vld [vmem:[%s4278_s6 + $0x18] sm:$0xff]  ;;  %v175_v40 = vld [vmem:[%s4278_s6 + $0x10] sm:$0xff] }
  0x4d   :  { %138 = vadd.xlane.f32.xlu0 %v137_v2  ;;  %3248 = vmatprep.subr.mxu0 %v176_v39  ;;  %v174_v41 = vld [vmem:[%s4278_s6 + $0x8] sm:$0xff]  ;;  %v173_v42 = vld [vmem:[%s4278_s6] sm:$0xff]  ;;  %v3867_v43 = vld [vmem:[%s4276_s4 + $0x18] sm:$0xff]  ;;  %v3728_v63 = vmov 0.0   ;;  %vm3729_vm1 = vmmov 0   ;;  %vm493_vm2 = vcmask 130048  }
  0x4e   :  { %3249 = vmatpush3.msra.mxu0 %v176_v39  ;;  %v3872_v44 = vld [vmem:[%s4276_s4 + $0x10] sm:$0xff]  ;;  %3259 = vmatprep.subr.mxu1 %v3867_v43  ;;  %v3887_v55 = vld [vmem:[%s4276_s4 + $0x8] sm:$0xff]  ;;  %v3895_v56 = vld [vmem:[%s4276_s4] sm:$0xff]  ;;  %s3727_s4 = smov 32   ;;  %vm663_vm3 = vcmask 64512   ;;  %s3730_s28 = smov 64  }
  0x4f   :  { %3250 = vmatprep.subr.mxu0 %v175_v40  ;;  %3260 = vmatpush3.msra.mxu1 %v3867_v43  ;;  %v3914_v59 = vld [vmem:[#allocation7] sm:$0xff]  ;;  %v3918_v60 = vld [vmem:[#allocation7 + $0x8] sm:$0xff]  ;;  %s3731_s29 = smov 80   ;;  %s3732_s30 = smov 112   ;;  %vm1471_vm4 = vcmask 392192   ;;  %vm2921_vm5 = vcmask 1041409  }
  0x50   :  { %3251 = vmatpush3.msra.mxu0 %v175_v40  ;;  %3261 = vmatprep.subr.mxu1 %v3872_v44  ;;  %s3733_s13 = smov 48   ;;  %vm2924_vm6 = vcmask 254976   ;;  %s3734_s14 = smov [#allocation13]  }
  0x51   :  { %141 = vadd.xlane.f32.xlu0 %v140_v3  ;;  %3252 = vmatprep.subr.mxu0 %v174_v41  ;;  %s3048_s8 = sshll.u32 %s3734_s14, 4  ;;  %s3049_s8 = int_to_ptr.vmem [resolvable:$true] %s3048_s8 }
  0x52   :  { %3253 = vmatpush3.msra.mxu0 %v174_v41  ;;  %3262 = vmatpush3.msra.mxu1 %v3872_v44  ;;  %s3686_s10 = scalar_lea.vmem %s3049_s8, 32  ;;  %p3691_p3 = scmp.lt.s32.totalorder %s3049_s8, %s3049_s8 }
  0x53   :  { %3254 = vmatprep.subr.mxu0 %v173_v42  ;;  %3263 = vmatprep.subr.mxu1 %v3887_v55  ;;  %p3687_p2 = scmp.ne.s32.totalorder %s3049_s8, %s3686_s10  ;;  %p3692_p4 = scmp.lt.s32.totalorder %s3686_s10, %s3686_s10 }
  0x54   :  { %3255 = vmatpush3.msra.mxu0 %v173_v42  ;;  %3264 = vmatpush3.msra.mxu1 %v3887_v55 }
  0x55   :  { %3270 = vmatprep.subr.mxu0 %v3867_v43  ;;  %3265 = vmatprep.subr.mxu1 %v3895_v56  ;;  %p3693_p5 = por %p3692_p4, %p3691_p3 }
  0x56   :  { %3266 = vmatpush3.msra.mxu1 %v3895_v56 }
  0x57   :  { %3281 = vmatprep.subr.mxu1 %v3728_v63  ;;  %p3694_p6 = pnand %p3693_p5, %p3687_p2 }
  0xd6   :  { %v139_v4 = vpop.xlane.xlu0 %138 }
  0xd7   :  { %v144_v5 = vmul.f32 0.03125, %v139_v4  ;;  %v3930_v4 = vld [vmem:[#allocation8 + $0x8] sm:$0xff] }
  0xd9   :  { %v146_v6 = vsub.f32 %v134_v0, %v144_v5 }
  0xda   :  { %v142_v7 = vpop.xlane.xlu0 %141 }
  0xdb   :  { %v145_v8 = vmul.f32 0.03125, %v142_v7  ;;  %v148_v9 = vmul.f32 %v146_v6, %v146_v6 }
  0xdd   :  { %v147_v10 = vsub.f32 %v135_v1, %v145_v8  ;;  %v150_v11 = vsel %vm136_vm0, %v148_v9, 0.0  ;;  %v3926_v1 = vld [vmem:[#allocation8] sm:$0xff] }
  0xde   :  { %151 = vadd.xlane.f32.xlu1 %v150_v11 }
  0xdf   :  { %v149_v12 = vmul.f32 %v147_v10, %v147_v10 }
  0xe1   :  { %v153_v13 = vsel %vm136_vm0, %v149_v12, 0.0 }
  0xe2   :  { %154 = vadd.xlane.f32.xlu1 %v153_v13 }
 0x167   :  { %v152_v14 = vpop.xlane.xlu1 %151 }
 0x168   :  { %v156_v15 = vmul.f32 0.03125, %v152_v14 }
 0x16a   :  { %v158_v16 = vadd.f32 1e-05, %v156_v15 }
 0x16b   :  { %v155_v17 = vpop.xlane.xlu1 %154 }
 0x16c   :  { %3504 = vrsqrt.f32 %v158_v16  ;;  %v157_v18 = vmul.f32 0.03125, %v155_v17 }
 0x16e   :  { %v159_v19 = vadd.f32 1e-05, %v157_v18 }
 0x170   :  { %3506 = vrsqrt.f32 %v159_v19 }
 0x179   :  { %v3505_v20 = vpop.eup %3504 }
 0x17a   :  { %v162_v22 = vmul.f32 %v3505_v20, %v146_v6 }
 0x17c   :  { %v3840_v23 = vmul.f32 %v3060_v21, %v162_v22 }
 0x17d   :  { %v3507_v24 = vpop.eup %3506 }
 0x17e   :  { %v191_v25 = vsel %vm136_vm0, %v3840_v23, 0.0  ;;  %v163_v26 = vmul.f32 %v3507_v24, %v147_v10 }
 0x17f   :  { %192 = vadd.xlane.f32.xlu0 %v191_v25 }
 0x180   :  { %v3844_v27 = vmul.f32 %v3060_v21, %v163_v26  ;;  %v3964_v26 = vld [vmem:[#allocation5] ss:$0 sm:$0xff] }
 0x182   :  { %v194_v28 = vsel %vm136_vm0, %v3844_v27, 0.0 }
 0x183   :  { %195 = vadd.xlane.f32.xlu1 %v194_v28 }
 0x208   :  { %v193_v29 = vpop.xlane.xlu0 %192 }
 0x209   :  { %v197_v30 = vmul.f32 0.03125, %v193_v29 }
 0x20b   :  { %v199_v31 = vsub.f32 %v3840_v23, %v197_v30 }
 0x20c   :  { %v196_v32 = vpop.xlane.xlu1 %195 }
 0x20d   :  { %v198_v33 = vmul.f32 0.03125, %v196_v32  ;;  %v201_v34 = vmul.f32 %v199_v31, %v199_v31  ;;  %v3967_v32 = vld [vmem:[#allocation5 + $0x1] ss:$0 sm:$0xff] }
 0x20f   :  { %v200_v35 = vsub.f32 %v3844_v27, %v198_v33  ;;  %v203_v36 = vsel %vm136_vm0, %v201_v34, 0.0 }
 0x210   :  { %204 = vadd.xlane.f32.xlu0 %v203_v36 }
 0x211   :  { %v202_v37 = vmul.f32 %v200_v35, %v200_v35 }
 0x213   :  { %v206_v38 = vsel %vm136_vm0, %v202_v37, 0.0 }
 0x214   :  { %207 = vadd.xlane.f32.xlu1 %v206_v38 }
 0x299   :  { %v205_v45 = vpop.xlane.xlu0 %204 }
 0x29a   :  { %v209_v46 = vmul.f32 0.03125, %v205_v45 }
 0x29c   :  { %v211_v47 = vadd.f32 1e-05, %v209_v46 }
 0x29d   :  { %v208_v48 = vpop.xlane.xlu1 %207 }
 0x29e   :  { %3508 = vrsqrt.f32 %v211_v47  ;;  %v210_v49 = vmul.f32 0.03125, %v208_v48 }
 0x2a0   :  { %v212_v50 = vadd.f32 1e-05, %v210_v49 }
 0x2a2   :  { %3510 = vrsqrt.f32 %v212_v50 }
 0x2ab   :  { %v3509_v51 = vpop.eup %3508 }
 0x2ac   :  { %v215_v52 = vmul.f32 %v3509_v51, %v199_v31 }
 0x2ae   :  { %3256 = vmatprep.mubr.msk.f32.mxu0 %vm136_vm0, %v215_v52 }
 0x2af   :  { %v3511_v53 = vpop.eup %3510 }
 0x2b0   :  { %v216_v54 = vmul.f32 %v3511_v53, %v200_v35 }
 0x2b2   :  { %3257 = vmatmul.mubr.msk.f32.vlgmr.msra.gmra.mxu0 %vm136_vm0, %v216_v54 }
 0x2b3   :  { %3271 = vmatpush3.msra.mxu0 %v3867_v43 }
 0x2b4   :  { %3272 = vmatprep.subr.mxu0 %v3872_v44 }
 0x2b5   :  { %3273 = vmatpush3.msra.mxu0 %v3872_v44 }
 0x2b6   :  { %3274 = vmatprep.subr.mxu0 %v3887_v55 }
 0x2b7   :  { %3275 = vmatpush3.msra.mxu0 %v3887_v55 }
 0x2b8   :  { %3276 = vmatprep.subr.mxu0 %v3895_v56 }
 0x2b9   :  { %3277 = vmatpush3.msra.mxu0 %v3895_v56 }
 0x2ba   :  { %3291 = vmatprep.subr.mxu0 %v3728_v63 }
 0x372   :  { %v3902_v57 = vpop.f32.mrf.mxu0 }
 0x373   :  { %397 = vrot.lane.b32.xlu1 %v3902_v57, %s3726_s27  ;;  %v299_v21 = vmul.f32 %v3902_v57, %v3918_v60 }
 0x374   :  { %v3906_v58 = vpop.f32.mrf.mxu0 }
 0x375   :  { %395 = vrot.lane.b32.xlu0 %v3906_v58, %s3726_s27  ;;  %3267 = vmatprep.mubr.msk.f32.mxu1 %vm136_vm0, %v3906_v58  ;;  %v298_v17 = vmul.f32 %v3906_v58, %v3914_v59 }
 0x376   :  { %3268 = vmatmul.mubr.msk.f32.vlgmr.msra.gmra.mxu1 %vm136_vm0, %v3902_v57 }
 0x377   :  { %387 = vrot.lane.b32.xlu1 %v3914_v59, %s3727_s4  ;;  %3283 = vmatprep.mubr.msk.f32.mxu1 %vm3729_vm1, %v3728_v63 }
 0x379   :  { %389 = vrot.lane.b32.xlu0 %v3918_v60, %s3727_s4 }
 0x3e5   :  { %v398_v62 = vpop.permute.xlu1 %397 }
 0x3e7   :  { %v396_v61 = vpop.permute.xlu0 %395 }
 0x3e8   :  { %3278 = vmatprep.mubr.msk.f32.mxu0 %vm136_vm0, %v396_v61 }
 0x3e9   :  { %3279 = vmatmul.mubr.msk.f32.vlgmr.msra.gmra.mxu0 %vm136_vm0, %v398_v62  ;;  %v3938_v6 = vpop.permute.xlu1 %387 }
 0x3ea   :  { %3293 = vmatprep.mubr.msk.f32.mxu0 %vm3729_vm1, %v3728_v63  ;;  %v393_v7 = vmul.f32 %v3938_v6, %v3906_v58 }
 0x3eb   :  { %v3942_v8 = vpop.permute.xlu0 %389 }
 0x3ec   :  { %v394_v11 = vmul.f32 %v3902_v57, %v3942_v8 }
 0x436   :  { %v3269_v14 = vpop.f32.mrf.mxu1 }
 0x437   :  { %v382_v19 = vmul.f32 %v3269_v14, %v3930_v4 }
 0x438   :  { %v372_v15 = vpop.f32.mrf.mxu1 }
 0x439   :  { %v381_v16 = vmul.f32 %v372_v15, %v3926_v1  ;;  %v384_v24 = vadd.f32 %v382_v19, %v299_v21 }
 0x43b   :  { %v383_v20 = vadd.f32 %v381_v16, %v298_v17 }
 0x4a9   :  { %v3280_v0 = vpop.f32.mrf.mxu0 }
 0x4aa   :  { %v479_v5 = vmul.f32 %v3280_v0, %v3930_v4 }
 0x4ab   :  { %v469_v2 = vpop.f32.mrf.mxu0 }
 0x4ac   :  { %v478_v3 = vmul.f32 %v469_v2, %v3926_v1 }
 0x4ae   :  { %482 = vrot.lane.b32.xlu1 %v478_v3, %s3727_s4 }
 0x4b2   :  { %484 = vrot.lane.b32.xlu1 %v479_v5, %s3727_s4 }
 0x520   :  { %v483_v9 = vpop.permute.xlu1 %482 }
 0x521   :  { %v488_v10 = vadd.f32 %v483_v9, %v393_v7 }
 0x523   :  { %491 = vrot.lane.b32.xlu0 %v488_v10, %s3726_s27 }
 0x524   :  { %v485_v12 = vpop.permute.xlu1 %484 }
 0x525   :  { %v489_v13 = vadd.f32 %v485_v12, %v394_v11 }
 0x527   :  { %570 = vrot.lane.b32.xlu1 %v489_v13, %s3726_s27 }
 0x595   :  { %v492_v18 = vpop.permute.xlu0 %491 }
 0x596   :  { %3282 = vmatpush3.xpose.msk.msra.mxu1 %vm493_vm2, %v492_v18 }
 0x597   :  { %3286 = vmatprep.subr.mxu1 %v3728_v63 }
 0x599   :  { %v571_v22 = vpop.permute.xlu1 %570  ;;  %3284 = vmatmul.mubr.msk.f32.vlgmr.msra.gmra.mxu1 %vm493_vm2, %v383_v20 }
 0x59a   :  { %3287 = vmatpush3.xpose.msk.msra.mxu1 %vm493_vm2, %v571_v22  ;;  %3288 = vmatprep.mubr.msk.f32.mxu1 %vm3729_vm1, %v3728_v63 }
 0x59b   :  { %3296 = vmatprep.subr.mxu1 %v3728_v63 }
 0x59d   :  { %3289 = vmatmul.mubr.msk.f32.vlgmr.msra.gmra.mxu1 %vm493_vm2, %v384_v24 }
 0x59e   :  { %3298 = vmatprep.mubr.msk.f32.mxu1 %vm3729_vm1, %v3728_v63 }
 0x659   :  { %v565_v25 = vpop.f32.mrf.mxu1 }
 0x65a   :  { %v647_v28 = vmul.f32 0.25, %v565_v25 }
 0x65b   :  { %v3285_v29 = vpop.f32.mrf.mxu1 }
 0x65c   :  { %v661_v30 = vadd.f32 %v3964_v26, %v647_v28 }
 0x65d   :  { %v643_v31 = vpop.f32.mrf.mxu1 }
 0x65e   :  { %v648_v33 = vmul.f32 0.25, %v643_v31  ;;  %v664_v34 = vsel %vm663_vm3, %v661_v30, -inf }
 0x65f   :  { %665 = vmax.xlane.f32.xlu0 %v664_v34  ;;  %v3290_v35 = vpop.f32.mrf.mxu1 }
 0x660   :  { %v662_v36 = vadd.f32 %v3967_v32, %v648_v33 }
 0x662   :  { %v667_v37 = vsel %vm663_vm3, %v662_v36, -inf }
 0x663   :  { %668 = vmax.xlane.f32.xlu1 %v667_v37 }
 0x674   :  { %762 = vrot.lane.b32.xlu1 %v3902_v57, %s3730_s28 }
 0x675   :  { %686 = vrot.lane.b32.xlu0 %v3906_v58, %s3730_s28 }
 0x678   :  { %840 = vrot.lane.b32.xlu1 %v488_v10, %s3731_s29 }
 0x67c   :  { %918 = vrot.lane.b32.xlu1 %v489_v13, %s3731_s29 }
 0x680   :  { %916 = vrot.lane.b32.xlu1 %v384_v24, %s3732_s30 }
 0x6e8   :  { %v666_v38 = vpop.xlane.xlu0 %665 }
 0x6e9   :  { %v670_v39 = vsub.f32 %v661_v30, %v666_v38 }
 0x6eb   :  { %v672_v40 = vmul.f32 1.442695, %v670_v39 }
 0x6ec   :  { %v687_v41 = vpop.permute.xlu0 %686  ;;  %v669_v42 = vpop.xlane.xlu1 %668 }
 0x6ed   :  { %3512 = vpow2.f32 %v672_v40  ;;  %v671_v45 = vsub.f32 %v662_v36, %v669_v42  ;;  %3292 = vmatpush3.msra.mxu0 %v687_v41 }
 0x6ee   :  { %3301 = vmatprep.subr.mxu0 %v3728_v63 }
 0x6ef   :  { %v674_v46 = vmul.f32 1.442695, %v671_v45 }
 0x6f0   :  { %v763_v47 = vpop.permute.xlu1 %762 }
 0x6f1   :  { %3514 = vpow2.f32 %v674_v46  ;;  %3297 = vmatpush3.msra.mxu1 %v763_v47  ;;  %v180_v47 = vld [vmem:[%s4279_s7 + $0x18] sm:$0xff] }
 0x6f2   :  { %3306 = vmatprep.subr.mxu1 %v3728_v63 }
 0x6f4   :  { %v841_v54 = vpop.permute.xlu1 %840 }
 0x6f8   :  { %v919_v2 = vpop.permute.xlu1 %918 }
 0x6fa   :  { %v3513_v48 = vpop.eup %3512 }
 0x6fb   :  { %v676_v49 = vsel %vm663_vm3, %v3513_v48, 0.0 }
 0x6fc   :  { %677 = vadd.xlane.f32.xlu0 %v676_v49  ;;  %v917_v7 = vpop.permute.xlu1 %916 }
 0x6fe   :  { %v3515_v50 = vpop.eup %3514 }
 0x6ff   :  { %v679_v51 = vsel %vm663_vm3, %v3515_v50, 0.0 }
 0x700   :  { %680 = vadd.xlane.f32.xlu0 %v679_v51 }
 0x716   :  { %838 = vrot.lane.b32.xlu0 %v383_v20, %s3732_s30 }
 0x785   :  { %v678_v52 = vpop.xlane.xlu0 %677 }
 0x786   :  { %3516 = vrcp.f32 %v678_v52 }
 0x789   :  { %v681_v53 = vpop.xlane.xlu0 %680 }
 0x78a   :  { %3518 = vrcp.f32 %v681_v53 }
 0x78d   :  { %v839_v5 = vpop.permute.xlu0 %838 }
 0x793   :  { %v3517_v61 = vpop.eup %3516 }
 0x794   :  { %v684_v62 = vmul.f32 %v3517_v61, %v3513_v48  ;;  %v179_v48 = vld [vmem:[%s4279_s7 + $0x10] sm:$0xff] }
 0x796   :  { %3294 = vmatmul.mubr.msk.f32.vlgmr.msra.gmra.mxu0 %vm663_vm3, %v684_v62 }
 0x797   :  { %v3519_v0 = vpop.eup %3518  ;;  %3302 = vmatpush3.xpose.msk.msra.mxu0 %vm493_vm2, %v841_v54  ;;  %3303 = vmatprep.mubr.msk.f32.mxu0 %vm3729_vm1, %v3728_v63 }
 0x798   :  { %v685_v3 = vmul.f32 %v3519_v0, %v3515_v50  ;;  %3311 = vmatprep.subr.mxu0 %v3728_v63 }
 0x79a   :  { %3299 = vmatmul.mubr.msk.f32.vlgmr.msra.gmra.mxu1 %vm663_vm3, %v685_v3  ;;  %3304 = vmatmul.mubr.msk.f32.vlgmr.msra.gmra.mxu0 %vm493_vm2, %v839_v5 }
 0x79b   :  { %3307 = vmatpush3.xpose.msk.msra.mxu1 %vm493_vm2, %v919_v2  ;;  %3308 = vmatprep.mubr.msk.f32.mxu1 %vm3729_vm1, %v3728_v63 }
 0x79c   :  { %3316 = vmatprep.subr.mxu1 %v3728_v63  ;;  %3313 = vmatprep.mubr.msk.f32.mxu0 %vm3729_vm1, %v3728_v63 }
 0x79e   :  { %3309 = vmatmul.mubr.msk.f32.vlgmr.msra.gmra.mxu1 %vm493_vm2, %v917_v7 }
 0x79f   :  { %3318 = vmatprep.mubr.msk.f32.mxu1 %vm3729_vm1, %v3728_v63 }
 0x856   :  { %v758_v9 = vpop.f32.mrf.mxu0 }
 0x858   :  { %v3295_v10 = vpop.f32.mrf.mxu0 }
 0x85a   :  { %v834_v11 = vpop.f32.mrf.mxu1  ;;  %v912_v12 = vpop.f32.mrf.mxu0 }
 0x85b   :  { %v994_v13 = vmul.f32 0.25, %v912_v12 }
 0x85c   :  { %v3300_v14 = vpop.f32.mrf.mxu1  ;;  %v3305_v15 = vpop.f32.mrf.mxu0 }
 0x85d   :  { %v996_v16 = vadd.f32 %v3964_v26, %v994_v13 }
 0x85e   :  { %v990_v17 = vpop.f32.mrf.mxu1 }
 0x85f   :  { %v995_v18 = vmul.f32 0.25, %v990_v17  ;;  %v998_v19 = vsel %vm663_vm3, %v996_v16, -inf }
 0x860   :  { %999 = vmax.xlane.f32.xlu0 %v998_v19  ;;  %v3310_v20 = vpop.f32.mrf.mxu1  ;;  %v183_v19 = vld [vmem:[#allocation10 + $0x10] sm:$0xff] }
 0x861   :  { %v997_v21 = vadd.f32 %v3967_v32, %v995_v18  ;;  %v184_v18 = vld [vmem:[#allocation10 + $0x18] sm:$0xff]  ;;  %v182_v20 = vld [vmem:[#allocation10 + $0x8] sm:$0xff] }
 0x863   :  { %v1001_v22 = vsel %vm663_vm3, %v997_v21, -inf }
 0x864   :  { %1002 = vmax.xlane.f32.xlu1 %v1001_v22 }
 0x875   :  { %1096 = vrot.lane.b32.xlu1 %v3902_v57, %s3733_s13  ;;  %v178_v57 = vld [vmem:[%s4279_s7 + $0x8] sm:$0xff] }
 0x8e9   :  { %v1000_v24 = vpop.xlane.xlu0 %999 }
 0x8ea   :  { %v1004_v25 = vsub.f32 %v996_v16, %v1000_v24 }
 0x8ec   :  { %v1006_v28 = vmul.f32 1.442695, %v1004_v25 }
 0x8ed   :  { %v1003_v29 = vpop.xlane.xlu1 %1002 }
 0x8ee   :  { %3520 = vpow2.f32 %v1006_v28  ;;  %v1005_v30 = vsub.f32 %v997_v21, %v1003_v29  ;;  %v181_v21 = vld [vmem:[#allocation10] sm:$0xff] }
 0x8f0   :  { %v1008_v31 = vmul.f32 1.442695, %v1005_v30 }
 0x8f1   :  { %v1097_v33 = vpop.permute.xlu1 %1096 }
 0x8f2   :  { %3522 = vpow2.f32 %v1008_v31  ;;  %3317 = vmatpush3.msra.mxu1 %v1097_v33 }
 0x8f3   :  { %3328 = vmatprep.subr.mxu1 %v178_v57 }
 0x8fb   :  { %v3521_v34 = vpop.eup %3520 }
 0x8fc   :  { %v1010_v35 = vsel %vm663_vm3, %v3521_v34, 0.0 }
 0x8fd   :  { %1011 = vadd.xlane.f32.xlu0 %v1010_v35 }
 0x8ff   :  { %v3523_v36 = vpop.eup %3522 }
 0x900   :  { %v1013_v37 = vsel %vm663_vm3, %v3523_v36, 0.0 }
 0x901   :  { %1014 = vadd.xlane.f32.xlu0 %v1013_v37  ;;  %v189_v37 = vld [vmem:[%s4281_s9 + $0x20] sm:$0xff] }
 0x917   :  { %1020 = vrot.lane.b32.xlu0 %v3906_v58, %s3733_s13  ;;  %v177_v58 = vld [vmem:[%s4279_s7] sm:$0xff] }
 0x986   :  { %v1012_v38 = vpop.xlane.xlu0 %1011 }
 0x987   :  { %3524 = vrcp.f32 %v1012_v38  ;;  %v187_v38 = vld [vmem:[%s4281_s9 + $0x10] sm:$0xff] }
 0x98a   :  { %v1015_v39 = vpop.xlane.xlu0 %1014 }
 0x98b   :  { %3526 = vrcp.f32 %v1015_v39  ;;  %v186_v39 = vld [vmem:[%s4281_s9 + $0x8] sm:$0xff] }
 0x98e   :  { %v1021_v40 = vpop.permute.xlu0 %1020 }
 0x98f   :  { %3312 = vmatpush3.msra.mxu0 %v1021_v40  ;;  %v185_v40 = vld [vmem:[%s4281_s9] sm:$0xff] }
 0x990   :  { %3321 = vmatprep.subr.mxu0 %v180_v47 }
 0x994   :  { %v3525_v41 = vpop.eup %3524 }
 0x995   :  { %v1018_v42 = vmul.f32 %v3525_v41, %v3521_v34 }
 0x997   :  { %3314 = vmatmul.mubr.msk.f32.vlgmr.msra.gmra.mxu0 %vm663_vm3, %v1018_v42 }
 0x998   :  { %v3527_v45 = vpop.eup %3526  ;;  %3322 = vmatpush3.msra.mxu0 %v180_v47 }
 0x999   :  { %v1019_v46 = vmul.f32 %v3527_v45, %v3523_v36  ;;  %3323 = vmatprep.subr.mxu0 %v179_v48  ;;  %v190_v36 = vld [vmem:[%s4281_s9 + $0x28] sm:$0xff] }
 0x99a   :  { %3324 = vmatpush3.msra.mxu0 %v179_v48 }
 0x99b   :  { %3319 = vmatmul.mubr.msk.f32.vlgmr.msra.gmra.mxu1 %vm663_vm3, %v1019_v46  ;;  %3335 = vmatprep.subr.mxu0 %v184_v18 }
 0x99c   :  { %3329 = vmatpush3.msra.mxu1 %v178_v57  ;;  %3332 = vmatprep.mubr.msk.f32.mxu1 %vm493_vm2, %v758_v9  ;;  %v188_v57 = vld [vmem:[%s4281_s9 + $0x18] sm:$0xff] }
 0x99d   :  { %3330 = vmatprep.subr.mxu1 %v177_v58 }
 0x99e   :  { %3331 = vmatpush3.msra.mxu1 %v177_v58 }
 0x99f   :  { %3333 = vmatmul.mubr.msk.f32.vlgmr.msra.gmra.mxu1 %vm493_vm2, %v834_v11  ;;  %3346 = vmatprep.subr.mxu1 %v190_v36 }
 0x9a0   :  { %3347 = vmatpush3.msra.mxu1 %v190_v36 }
 0x9a1   :  { %3348 = vmatprep.subr.mxu1 %v189_v37 }
 0x9a2   :  { %3349 = vmatpush3.msra.mxu1 %v189_v37 }
 0x9a3   :  { %3350 = vmatprep.subr.mxu1 %v188_v57 }
 0x9a4   :  { %3351 = vmatpush3.msra.mxu1 %v188_v57 }
 0x9a5   :  { %3352 = vmatprep.subr.mxu1 %v187_v38 }
 0x9a6   :  { %3353 = vmatpush3.msra.mxu1 %v187_v38 }
 0x9a7   :  { %3354 = vmatprep.subr.mxu1 %v186_v39 }
 0x9a8   :  { %3355 = vmatpush3.msra.mxu1 %v186_v39 }
 0x9a9   :  { %3356 = vmatprep.subr.mxu1 %v185_v40 }
 0x9aa   :  { %3357 = vmatpush3.msra.mxu1 %v185_v40 }
 0x9ab   :  { %3372 = vmatprep.subr.mxu1 %v3867_v43 }
 0xa57   :  { %v1092_v49 = vpop.f32.mrf.mxu0 }
 0xa58   :  { %3325 = vmatprep.mubr.msk.f32.mxu0 %vm493_vm2, %v1092_v49 }
 0xa59   :  { %v3315_v50 = vpop.f32.mrf.mxu0 }
 0xa5b   :  { %v1168_v51 = vpop.f32.mrf.mxu1 }
 0xa5c   :  { %3326 = vmatmul.mubr.msk.f32.vlgmr.msra.gmra.mxu0 %vm493_vm2, %v1168_v51 }
 0xa5d   :  { %v3320_v52 = vpop.f32.mrf.mxu1  ;;  %3336 = vmatpush3.msra.mxu0 %v184_v18 }
 0xa5e   :  { %3337 = vmatprep.subr.mxu0 %v183_v19 }
 0xa5f   :  { %v3334_v53 = vpop.f32.mrf.mxu1  ;;  %3338 = vmatpush3.msra.mxu0 %v183_v19 }
 0xa60   :  { %3339 = vmatprep.subr.mxu0 %v182_v20 }
 0xa61   :  { %v1325_v62 = vpop.f32.mrf.mxu1  ;;  %3340 = vmatpush3.msra.mxu0 %v182_v20 }
 0xa62   :  { %3341 = vmatprep.subr.mxu0 %v181_v21 }
 0xa63   :  { %3342 = vmatpush3.msra.mxu0 %v181_v21 }
 0xb1c   :  { %v3327_v54 = vpop.f32.mrf.mxu0 }
 0xb1d   :  { %v1331_v61 = vadd.f32 %v3334_v53, %v3327_v54 }
 0xb1e   :  { %v1244_v0 = vpop.f32.mrf.mxu0 }
 0xb1f   :  { %v4029_v2 = vadd.f32 %v1331_v61, %v3844_v27  ;;  %v1326_v3 = vadd.f32 %v1325_v62, %v1244_v0 }
 0xb21   :  { %v4032_v5 = vadd.f32 %v1326_v3, %v3840_v23  ;;  %v1339_v7 = vsel %vm136_vm0, %v4029_v2, 0.0 }
 0xb22   :  { %1340 = vadd.xlane.f32.xlu0 %v1339_v7 }
 0xb23   :  { %v1336_v9 = vsel %vm136_vm0, %v4032_v5, 0.0 }
 0xb24   :  { %1337 = vadd.xlane.f32.xlu1 %v1336_v9 }
 0xbab   :  { %v1341_v10 = vpop.xlane.xlu0 %1340 }
 0xbac   :  { %v1343_v11 = vmul.f32 0.03125, %v1341_v10 }
 0xbad   :  { %v1338_v12 = vpop.xlane.xlu1 %1337 }
 0xbae   :  { %v1345_v13 = vsub.f32 %v4029_v2, %v1343_v11  ;;  %v1342_v14 = vmul.f32 0.03125, %v1338_v12 }
 0xbb0   :  { %v1344_v27 = vsub.f32 %v4032_v5, %v1342_v14  ;;  %v1347_v15 = vmul.f32 %v1345_v13, %v1345_v13 }
 0xbb2   :  { %v1351_v23 = vsel %vm136_vm0, %v1347_v15, 0.0  ;;  %v1346_v16 = vmul.f32 %v1344_v27, %v1344_v27 }
 0xbb3   :  { %1352 = vadd.xlane.f32.xlu1 %v1351_v23 }
 0xbb4   :  { %v1348_v17 = vsel %vm136_vm0, %v1346_v16, 0.0 }
 0xbb5   :  { %1349 = vadd.xlane.f32.xlu0 %v1348_v17 }
 0xc3c   :  { %v1353_v22 = vpop.xlane.xlu1 %1352 }
 0xc3d   :  { %v1355_v24 = vmul.f32 0.03125, %v1353_v22 }
 0xc3e   :  { %v1350_v25 = vpop.xlane.xlu0 %1349 }
 0xc3f   :  { %v1357_v28 = vadd.f32 1e-05, %v1355_v24  ;;  %v1354_v29 = vmul.f32 0.03125, %v1350_v25 }
 0xc41   :  { %v1356_v30 = vadd.f32 1e-05, %v1354_v29  ;;  %3528 = vrsqrt.f32 %v1357_v28 }
 0xc43   :  { %3530 = vrsqrt.f32 %v1356_v30  ;;  %v3092_v30 = vld [vmem:[%s4278_s6 + $0x38] sm:$0xff] }
 0xc44   :  { %3361 = vmatprep.subr.mxu0 %v3092_v30 }
 0xc4e   :  { %v3529_v31 = vpop.eup %3528 }
 0xc4f   :  { %v1361_v35 = vmul.f32 %v3529_v31, %v1345_v13  ;;  %v3091_v31 = vld [vmem:[%s4278_s6 + $0x30] sm:$0xff] }
 0xc50   :  { %v3531_v33 = vpop.eup %3530 }
 0xc51   :  { %v1360_v34 = vmul.f32 %v3531_v33, %v1344_v27  ;;  %v3090_v33 = vld [vmem:[%s4278_s6 + $0x28] sm:$0xff] }
 0xc53   :  { %3343 = vmatprep.mubr.msk.f32.mxu0 %vm136_vm0, %v1360_v34  ;;  %v3089_v34 = vld [vmem:[%s4278_s6 + $0x20] sm:$0xff] }
 0xc54   :  { %3344 = vmatmul.mubr.msk.f32.vlgmr.msra.gmra.mxu0 %vm136_vm0, %v1361_v35 }
 0xc55   :  { %3362 = vmatpush3.msra.mxu0 %v3092_v30 }
 0xc56   :  { %3363 = vmatprep.subr.mxu0 %v3091_v31 }
 0xc57   :  { %3364 = vmatpush3.msra.mxu0 %v3091_v31 }
 0xc58   :  { %3365 = vmatprep.subr.mxu0 %v3090_v33 }
 0xc59   :  { %3366 = vmatpush3.msra.mxu0 %v3090_v33 }
 0xc5a   :  { %3367 = vmatprep.subr.mxu0 %v3089_v34 }
 0xc5b   :  { %3368 = vmatpush3.msra.mxu0 %v3089_v34 }
 0xc5c   :  { %3383 = vmatprep.subr.mxu0 %v3867_v43 }
 0xd14   :  { %v3345_v41 = vpop.f32.mrf.mxu0 }
 0xd15   :  { %1465 = vrot.lane.b32.xlu1 %v3345_v41, %s3731_s29  ;;  %v1444_v46 = vmul.f32 %v3345_v41, %v3345_v41 }
 0xd16   :  { %v1434_v42 = vpop.f32.mrf.mxu0 }
 0xd17   :  { %1463 = vrot.lane.b32.xlu0 %v1434_v42, %s3731_s29  ;;  %v1443_v45 = vmul.f32 %v1434_v42, %v1434_v42  ;;  %v1446_v47 = vmul.f32 %v3345_v41, %v1444_v46 }
 0xd19   :  { %v1445_v58 = vmul.f32 %v1443_v45, %v1434_v42  ;;  %v1448_v49 = vmul.f32 0.044715, %v1446_v47 }
 0xd1b   :  { %v1447_v48 = vmul.f32 0.044715, %v1445_v58  ;;  %v1450_v51 = vadd.f32 %v3345_v41, %v1448_v49 }
 0xd1d   :  { %v1449_v50 = vadd.f32 %v1447_v48, %v1434_v42  ;;  %v1452_v53 = vmul.f32 0.7978846, %v1450_v51 }
 0xd1f   :  { %v1451_v52 = vmul.f32 0.7978846, %v1449_v50 }
 0xd21   :  { %3532 = vtanh.f32 %v1451_v52 }
 0xd22   :  { %3534 = vtanh.f32 %v1452_v53 }
 0xd2e   :  { %v3533_v54 = vpop.eup %3532 }
 0xd2f   :  { %v3535_v61 = vpop.eup %3534  ;;  %v1455_v62 = vadd.f32 1.0, %v3533_v54 }
 0xd30   :  { %v1456_v0 = vadd.f32 1.0, %v3535_v61 }
 0xd31   :  { %v1457_v3 = vmul.f32 0.5, %v1455_v62 }
 0xd32   :  { %v1458_v7 = vmul.f32 0.5, %v1456_v0 }
 0xd33   :  { %v1459_v10 = vmul.f32 %v1457_v3, %v1434_v42 }
 0xd34   :  { %v1460_v11 = vmul.f32 %v3345_v41, %v1458_v7 }
 0xd87   :  { %v1466_v9 = vpop.permute.xlu1 %1465 }
 0xd88   :  { %v1470_v14 = vmul.f32 %v1466_v9, %v1460_v11 }
 0xd89   :  { %v1464_v12 = vpop.permute.xlu0 %1463 }
 0xd8a   :  { %v1469_v13 = vmul.f32 %v1464_v12, %v1459_v10 }
 0xd8c   :  { %3358 = vmatprep.mubr.msk.f32.mxu1 %vm1471_vm4, %v1469_v13 }
 0xd8d   :  { %3359 = vmatmul.mubr.msk.f32.vlgmr.msra.gmra.mxu1 %vm1471_vm4, %v1470_v14 }
 0xd8e   :  { %3373 = vmatpush3.msra.mxu1 %v3867_v43 }
 0xd8f   :  { %3374 = vmatprep.subr.mxu1 %v3872_v44 }
 0xd90   :  { %3375 = vmatpush3.msra.mxu1 %v3872_v44 }
 0xd91   :  { %3376 = vmatprep.subr.mxu1 %v3887_v55 }
 0xd92   :  { %3377 = vmatpush3.msra.mxu1 %v3887_v55 }
 0xd93   :  { %3378 = vmatprep.subr.mxu1 %v3895_v56 }
 0xd94   :  { %3379 = vmatpush3.msra.mxu1 %v3895_v56 }
 0xd95   :  { %3394 = vmatprep.subr.mxu1 %v3728_v63 }
 0xe4d   :  { %v3360_v27 = vpop.f32.mrf.mxu1 }
 0xe4e   :  { %v4076_v15 = vadd.f32 %v3360_v27, %v4029_v2 }
 0xe4f   :  { %v1544_v23 = vpop.f32.mrf.mxu1 }
 0xe50   :  { %v4079_v16 = vadd.f32 %v1544_v23, %v4032_v5  ;;  %v1580_v17 = vsel %vm136_vm0, %v4076_v15, 0.0 }
 0xe51   :  { %1581 = vadd.xlane.f32.xlu0 %v1580_v17 }
 0xe52   :  { %v1577_v18 = vsel %vm136_vm0, %v4079_v16, 0.0 }
 0xe53   :  { %1578 = vadd.xlane.f32.xlu1 %v1577_v18 }
 0xeda   :  { %v1582_v19 = vpop.xlane.xlu0 %1581 }
 0xedb   :  { %v1584_v20 = vmul.f32 0.03125, %v1582_v19 }
 0xedc   :  { %v1579_v21 = vpop.xlane.xlu1 %1578 }
 0xedd   :  { %v1586_v22 = vsub.f32 %v4076_v15, %v1584_v20  ;;  %v1583_v24 = vmul.f32 0.03125, %v1579_v21 }
 0xedf   :  { %v1585_v2 = vsub.f32 %v4079_v16, %v1583_v24  ;;  %v1588_v25 = vmul.f32 %v1586_v22, %v1586_v22 }
 0xee1   :  { %v1592_v5 = vsel %vm136_vm0, %v1588_v25, 0.0  ;;  %v1587_v28 = vmul.f32 %v1585_v2, %v1585_v2 }
 0xee2   :  { %1593 = vadd.xlane.f32.xlu1 %v1592_v5 }
 0xee3   :  { %v1589_v29 = vsel %vm136_vm0, %v1587_v28, 0.0 }
 0xee4   :  { %1590 = vadd.xlane.f32.xlu0 %v1589_v29 }
 0xf6b   :  { %v1594_v35 = vpop.xlane.xlu1 %1593 }
 0xf6c   :  { %v1596_v36 = vmul.f32 0.03125, %v1594_v35 }
 0xf6d   :  { %v1591_v37 = vpop.xlane.xlu0 %1590 }
 0xf6e   :  { %v1598_v57 = vadd.f32 1e-05, %v1596_v36  ;;  %v1595_v38 = vmul.f32 0.03125, %v1591_v37 }
 0xf70   :  { %v1597_v39 = vadd.f32 1e-05, %v1595_v38  ;;  %3536 = vrsqrt.f32 %v1598_v57 }
 0xf72   :  { %3538 = vrsqrt.f32 %v1597_v39 }
 0xf7d   :  { %v3537_v40 = vpop.eup %3536 }
 0xf7e   :  { %v1602_v45 = vmul.f32 %v3537_v40, %v1586_v22 }
 0xf7f   :  { %v3539_v41 = vpop.eup %3538 }
 0xf80   :  { %v1601_v42 = vmul.f32 %v3539_v41, %v1585_v2 }
 0xf82   :  { %3369 = vmatprep.mubr.msk.f32.mxu0 %vm136_vm0, %v1601_v42 }
 0xf83   :  { %3370 = vmatmul.mubr.msk.f32.vlgmr.msra.gmra.mxu0 %vm136_vm0, %v1602_v45 }
 0xf84   :  { %3384 = vmatpush3.msra.mxu0 %v3867_v43 }
 0xf85   :  { %3385 = vmatprep.subr.mxu0 %v3872_v44 }
 0xf86   :  { %3386 = vmatpush3.msra.mxu0 %v3872_v44 }
 0xf87   :  { %3387 = vmatprep.subr.mxu0 %v3887_v55 }
 0xf88   :  { %3388 = vmatpush3.msra.mxu0 %v3887_v55 }
 0xf89   :  { %3389 = vmatprep.subr.mxu0 %v3895_v56 }
 0xf8a   :  { %3390 = vmatpush3.msra.mxu0 %v3895_v56 }
 0xf8b   :  { %3399 = vmatprep.subr.mxu0 %v3728_v63 }
0x1043   :  { %v4112_v46 = vpop.f32.mrf.mxu0 }
0x1044   :  { %1775 = vrot.lane.b32.xlu1 %v4112_v46, %s3726_s27  ;;  %v1772_v52 = vmul.f32 %v4112_v46, %v3942_v8  ;;  %v1685_v8 = vmul.f32 %v4112_v46, %v3918_v60 }
0x1045   :  { %v4116_v43 = vpop.f32.mrf.mxu0 }
0x1046   :  { %1773 = vrot.lane.b32.xlu0 %v4116_v43, %s3726_s27  ;;  %3380 = vmatprep.mubr.msk.f32.mxu1 %vm136_vm0, %v4116_v43  ;;  %v1771_v49 = vmul.f32 %v4116_v43, %v3938_v6  ;;  %v1684_v3 = vmul.f32 %v4116_v43, %v3914_v59 }
0x1047   :  { %3381 = vmatmul.mubr.msk.f32.vlgmr.msra.gmra.mxu1 %vm136_vm0, %v4112_v46 }
0x1048   :  { %3396 = vmatprep.mubr.msk.f32.mxu1 %vm3729_vm1, %v3728_v63 }
0x10b6   :  { %v1776_v55 = vpop.permute.xlu1 %1775 }
0x10b8   :  { %v1774_v44 = vpop.permute.xlu0 %1773 }
0x10b9   :  { %3391 = vmatprep.mubr.msk.f32.mxu0 %vm136_vm0, %v1774_v44 }
0x10ba   :  { %3392 = vmatmul.mubr.msk.f32.vlgmr.msra.gmra.mxu0 %vm136_vm0, %v1776_v55 }
0x10bb   :  { %3401 = vmatprep.mubr.msk.f32.mxu0 %vm3729_vm1, %v3728_v63 }
0x1107   :  { %v3382_v61 = vpop.f32.mrf.mxu1 }
0x1108   :  { %v1768_v6 = vmul.f32 %v3382_v61, %v3930_v4 }
0x1109   :  { %v1758_v62 = vpop.f32.mrf.mxu1 }
0x110a   :  { %v1767_v0 = vmul.f32 %v1758_v62, %v3926_v1  ;;  %v1770_v59 = vadd.f32 %v1768_v6, %v1685_v8 }
0x110c   :  { %v1769_v9 = vadd.f32 %v1767_v0, %v1684_v3 }
0x117a   :  { %v3393_v56 = vpop.f32.mrf.mxu0 }
0x117b   :  { %v1857_v48 = vmul.f32 %v3393_v56, %v3930_v4 }
0x117c   :  { %v1847_v58 = vpop.f32.mrf.mxu0 }
0x117d   :  { %v1856_v47 = vmul.f32 %v1847_v58, %v3926_v1 }
0x117f   :  { %1860 = vrot.lane.b32.xlu1 %v1856_v47, %s3727_s4 }
0x1183   :  { %1862 = vrot.lane.b32.xlu1 %v1857_v48, %s3727_s4 }
0x11f1   :  { %v1861_v50 = vpop.permute.xlu1 %1860 }
0x11f2   :  { %v1866_v51 = vadd.f32 %v1861_v50, %v1771_v49 }
0x11f4   :  { %1869 = vrot.lane.b32.xlu0 %v1866_v51, %s3726_s27 }
0x11f5   :  { %v1863_v53 = vpop.permute.xlu1 %1862 }
0x11f6   :  { %v1867_v54 = vadd.f32 %v1863_v53, %v1772_v52 }
0x11f8   :  { %1947 = vrot.lane.b32.xlu1 %v1867_v54, %s3726_s27 }
0x1266   :  { %v1870_v7 = vpop.permute.xlu0 %1869 }
0x1267   :  { %3395 = vmatpush3.xpose.msk.msra.mxu1 %vm493_vm2, %v1870_v7 }
0x1268   :  { %3404 = vmatprep.subr.mxu1 %v3728_v63 }
0x126a   :  { %v1948_v10 = vpop.permute.xlu1 %1947  ;;  %3397 = vmatmul.mubr.msk.f32.vlgmr.msra.gmra.mxu1 %vm493_vm2, %v1769_v9 }
0x126b   :  { %3400 = vmatpush3.xpose.msk.msra.mxu0 %vm493_vm2, %v1948_v10  ;;  %3406 = vmatprep.mubr.msk.f32.mxu1 %vm3729_vm1, %v3728_v63 }
0x126c   :  { %3409 = vmatprep.subr.mxu0 %v3728_v63 }
0x126e   :  { %3402 = vmatmul.mubr.msk.f32.vlgmr.msra.gmra.mxu0 %vm493_vm2, %v1770_v59 }
0x126f   :  { %3411 = vmatprep.mubr.msk.f32.mxu0 %vm3729_vm1, %v3728_v63 }
0x132a   :  { %v1942_v1 = vpop.f32.mrf.mxu1 }
0x132b   :  { %v2024_v4 = vmul.f32 0.25, %v1942_v1 }
0x132c   :  { %v3398_v11 = vpop.f32.mrf.mxu1 }
0x132d   :  { %v2026_v60 = vadd.f32 %v3964_v26, %v2024_v4 }
0x132e   :  { %v2020_v12 = vpop.f32.mrf.mxu0 }
0x132f   :  { %v2025_v13 = vmul.f32 0.25, %v2020_v12  ;;  %v2028_v14 = vsel %vm663_vm3, %v2026_v60, -inf }
0x1330   :  { %v3403_v27 = vpop.f32.mrf.mxu0  ;;  %2029 = vmax.xlane.f32.xlu0 %v2028_v14  ;;  %v3095_v14 = vld [vmem:[%s4279_s7 + $0x30] sm:$0xff] }
0x1331   :  { %v2027_v23 = vadd.f32 %v3967_v32, %v2025_v13  ;;  %v3096_v13 = vld [vmem:[%s4279_s7 + $0x38] sm:$0xff] }
0x1333   :  { %v2031_v17 = vsel %vm663_vm3, %v2027_v23, -inf }
0x1334   :  { %2032 = vmax.xlane.f32.xlu1 %v2031_v17 }
0x1345   :  { %2126 = vrot.lane.b32.xlu1 %v4112_v46, %s3730_s28 }
0x1349   :  { %2204 = vrot.lane.b32.xlu1 %v1866_v51, %s3731_s29 }
0x134d   :  { %2282 = vrot.lane.b32.xlu1 %v1867_v54, %s3731_s29 }
0x1351   :  { %2280 = vrot.lane.b32.xlu1 %v1770_v59, %s3732_s30 }
0x13b9   :  { %v2030_v18 = vpop.xlane.xlu0 %2029 }
0x13ba   :  { %v2034_v19 = vsub.f32 %v2026_v60, %v2030_v18  ;;  %v3093_v60 = vld [vmem:[%s4279_s7 + $0x20] sm:$0xff] }
0x13bc   :  { %v2036_v22 = vmul.f32 1.442695, %v2034_v19 }
0x13bd   :  { %v2033_v20 = vpop.xlane.xlu1 %2032 }
0x13be   :  { %v2035_v21 = vsub.f32 %v2027_v23, %v2033_v20 }
0x13c0   :  { %v2038_v24 = vmul.f32 1.442695, %v2035_v21 }
0x13c1   :  { %v2127_v2 = vpop.permute.xlu1 %2126 }
0x13c2   :  { %3540 = vpow2.f32 %v2038_v24  ;;  %3410 = vmatpush3.msra.mxu0 %v2127_v2 }
0x13c3   :  { %3419 = vmatprep.subr.mxu0 %v3728_v63  ;;  %3542 = vpow2.f32 %v2036_v22 }
0x13c5   :  { %v2205_v33 = vpop.permute.xlu1 %2204 }
0x13c9   :  { %v2283_v36 = vpop.permute.xlu1 %2282 }
0x13cd   :  { %v2281_v39 = vpop.permute.xlu1 %2280 }
0x13cf   :  { %v3541_v25 = vpop.eup %3540 }
0x13d0   :  { %v2043_v5 = vsel %vm663_vm3, %v3541_v25, 0.0  ;;  %v3543_v28 = vpop.eup %3542 }
0x13d1   :  { %2044 = vadd.xlane.f32.xlu0 %v2043_v5  ;;  %v2040_v29 = vsel %vm663_vm3, %v3543_v28, 0.0 }
0x13d5   :  { %2041 = vadd.xlane.f32.xlu0 %v2040_v29 }
0x13eb   :  { %2050 = vrot.lane.b32.xlu0 %v4116_v43, %s3730_s28 }
0x13ef   :  { %2202 = vrot.lane.b32.xlu0 %v1769_v9, %s3732_s30 }
0x145a   :  { %v2045_v30 = vpop.xlane.xlu0 %2044 }
0x145b   :  { %3544 = vrcp.f32 %v2045_v30 }
0x145e   :  { %v2042_v31 = vpop.xlane.xlu0 %2041 }
0x145f   :  { %3546 = vrcp.f32 %v2042_v31 }
0x1462   :  { %v2051_v34 = vpop.permute.xlu0 %2050 }
0x1463   :  { %3405 = vmatpush3.msra.mxu1 %v2051_v34 }
0x1464   :  { %3414 = vmatprep.subr.mxu1 %v3728_v63 }
0x1466   :  { %v2203_v40 = vpop.permute.xlu0 %2202 }
0x1468   :  { %v3545_v35 = vpop.eup %3544 }
0x1469   :  { %v2049_v37 = vmul.f32 %v3545_v35, %v3541_v25 }
0x146b   :  { %3412 = vmatmul.mubr.msk.f32.vlgmr.msra.gmra.mxu0 %vm663_vm3, %v2049_v37 }
0x146c   :  { %v3547_v57 = vpop.eup %3546  ;;  %3420 = vmatpush3.xpose.msk.msra.mxu0 %vm493_vm2, %v2283_v36  ;;  %3421 = vmatprep.mubr.msk.f32.mxu0 %vm3729_vm1, %v3728_v63 }
0x146d   :  { %v2048_v38 = vmul.f32 %v3547_v57, %v3543_v28  ;;  %3429 = vmatprep.subr.mxu0 %v3728_v63 }
0x146f   :  { %3407 = vmatmul.mubr.msk.f32.vlgmr.msra.gmra.mxu1 %vm663_vm3, %v2048_v38  ;;  %3422 = vmatmul.mubr.msk.f32.vlgmr.msra.gmra.mxu0 %vm493_vm2, %v2281_v39  ;;  %v1569_v38 = vld [vmem:[#allocation10 + $0x38] sm:$0xff]  ;;  %v1568_v39 = vld [vmem:[#allocation10 + $0x30] sm:$0xff] }
0x1470   :  { %3415 = vmatpush3.xpose.msk.msra.mxu1 %vm493_vm2, %v2205_v33  ;;  %3416 = vmatprep.mubr.msk.f32.mxu1 %vm3729_vm1, %v3728_v63 }
0x1471   :  { %3424 = vmatprep.subr.mxu1 %v3728_v63  ;;  %3431 = vmatprep.mubr.msk.f32.mxu0 %vm3729_vm1, %v3728_v63 }
0x1473   :  { %3417 = vmatmul.mubr.msk.f32.vlgmr.msra.gmra.mxu1 %vm493_vm2, %v2203_v40  ;;  %v1567_v40 = vld [vmem:[#allocation10 + $0x28] sm:$0xff] }
0x1474   :  { %3426 = vmatprep.mubr.msk.f32.mxu1 %vm3729_vm1, %v3728_v63 }
0x152b   :  { %v2198_v41 = vpop.f32.mrf.mxu0 }
0x152d   :  { %v3413_v42 = vpop.f32.mrf.mxu0 }
0x152f   :  { %v2122_v45 = vpop.f32.mrf.mxu1  ;;  %v2354_v44 = vpop.f32.mrf.mxu0 }
0x1530   :  { %v2359_v55 = vmul.f32 0.25, %v2354_v44 }
0x1531   :  { %v3408_v56 = vpop.f32.mrf.mxu1  ;;  %v3423_v58 = vpop.f32.mrf.mxu0 }
0x1532   :  { %v2361_v47 = vadd.f32 %v3967_v32, %v2359_v55 }
0x1533   :  { %v2276_v48 = vpop.f32.mrf.mxu1 }
0x1534   :  { %v2358_v49 = vmul.f32 0.25, %v2276_v48  ;;  %v2365_v50 = vsel %vm663_vm3, %v2361_v47, -inf }
0x1535   :  { %2366 = vmax.xlane.f32.xlu1 %v2365_v50  ;;  %v3418_v51 = vpop.f32.mrf.mxu1 }
0x1536   :  { %v2360_v52 = vadd.f32 %v3964_v26, %v2358_v49  ;;  %v3102_v51 = vld [vmem:[%s4281_s9 + $0x58] sm:$0xff] }
0x1538   :  { %v2362_v53 = vsel %vm663_vm3, %v2360_v52, -inf }
0x1539   :  { %2363 = vmax.xlane.f32.xlu0 %v2362_v53  ;;  %v3100_v53 = vld [vmem:[%s4281_s9 + $0x48] sm:$0xff] }
0x1546   :  { %2460 = vrot.lane.b32.xlu1 %v4112_v46, %s3733_s13  ;;  %v3094_v46 = vld [vmem:[%s4279_s7 + $0x28] sm:$0xff] }
0x15be   :  { %v2367_v54 = vpop.xlane.xlu1 %2366 }
0x15bf   :  { %v2369_v61 = vsub.f32 %v2361_v47, %v2367_v54  ;;  %v3099_v54 = vld [vmem:[%s4281_s9 + $0x40] sm:$0xff] }
0x15c1   :  { %v2372_v62 = vmul.f32 1.442695, %v2369_v61  ;;  %v3098_v61 = vld [vmem:[%s4281_s9 + $0x38] sm:$0xff] }
0x15c2   :  { %v2461_v0 = vpop.permute.xlu1 %2460  ;;  %v2364_v3 = vpop.xlane.xlu0 %2363 }
0x15c3   :  { %3548 = vpow2.f32 %v2372_v62  ;;  %v2368_v32 = vsub.f32 %v2360_v52, %v2364_v3  ;;  %3430 = vmatpush3.msra.mxu0 %v2461_v0  ;;  %v3101_v52 = vld [vmem:[%s4281_s9 + $0x50] sm:$0xff] }
0x15c4   :  { %3441 = vmatprep.subr.mxu0 %v3094_v46  ;;  %v3097_v62 = vld [vmem:[%s4281_s9 + $0x30] sm:$0xff] }
0x15c5   :  { %v2370_v7 = vmul.f32 1.442695, %v2368_v32 }
0x15c7   :  { %3550 = vpow2.f32 %v2370_v7 }
0x15d0   :  { %v3549_v6 = vpop.eup %3548 }
0x15d1   :  { %v2377_v9 = vsel %vm663_vm3, %v3549_v6, 0.0 }
0x15d2   :  { %2378 = vadd.xlane.f32.xlu0 %v2377_v9 }
0x15d4   :  { %v3551_v26 = vpop.eup %3550 }
0x15d5   :  { %v2374_v8 = vsel %vm663_vm3, %v3551_v26, 0.0 }
0x15d6   :  { %2375 = vadd.xlane.f32.xlu0 %v2374_v8 }
0x15ec   :  { %2384 = vrot.lane.b32.xlu0 %v4116_v43, %s3733_s13 }
0x165b   :  { %v2379_v10 = vpop.xlane.xlu0 %2378 }
0x165c   :  { %3552 = vrcp.f32 %v2379_v10 }
0x165f   :  { %v2376_v59 = vpop.xlane.xlu0 %2375 }
0x1660   :  { %3554 = vrcp.f32 %v2376_v59 }
0x1663   :  { %v2385_v1 = vpop.permute.xlu0 %2384 }
0x1664   :  { %3425 = vmatpush3.msra.mxu1 %v2385_v1 }
0x1665   :  { %3434 = vmatprep.subr.mxu1 %v3096_v13 }
0x1669   :  { %v3553_v4 = vpop.eup %3552 }
0x166a   :  { %v2383_v11 = vmul.f32 %v3553_v4, %v3549_v6 }
0x166c   :  { %3432 = vmatmul.mubr.msk.f32.vlgmr.msra.gmra.mxu0 %vm663_vm3, %v2383_v11 }
0x166d   :  { %v3555_v43 = vpop.eup %3554  ;;  %3442 = vmatpush3.msra.mxu0 %v3094_v46  ;;  %3445 = vmatprep.mubr.msk.f32.mxu0 %vm493_vm2, %v2122_v45 }
0x166e   :  { %3443 = vmatprep.subr.mxu0 %v3093_v60  ;;  %v2382_v12 = vmul.f32 %v3555_v43, %v3551_v26 }
0x166f   :  { %3444 = vmatpush3.msra.mxu0 %v3093_v60 }
0x1670   :  { %3427 = vmatmul.mubr.msk.f32.vlgmr.msra.gmra.mxu1 %vm663_vm3, %v2382_v12  ;;  %3446 = vmatmul.mubr.msk.f32.vlgmr.msra.gmra.mxu0 %vm493_vm2, %v2198_v41  ;;  %v1566_v41 = vld [vmem:[#allocation10 + $0x20] sm:$0xff] }
0x1671   :  { %3435 = vmatpush3.msra.mxu1 %v3096_v13  ;;  %3459 = vmatprep.subr.mxu0 %v3102_v51 }
0x1672   :  { %3436 = vmatprep.subr.mxu1 %v3095_v14  ;;  %3460 = vmatpush3.msra.mxu0 %v3102_v51 }
0x1673   :  { %3437 = vmatpush3.msra.mxu1 %v3095_v14  ;;  %3461 = vmatprep.subr.mxu0 %v3101_v52 }
0x1674   :  { %3448 = vmatprep.subr.mxu1 %v1569_v38  ;;  %3462 = vmatpush3.msra.mxu0 %v3101_v52 }
0x1675   :  { %3463 = vmatprep.subr.mxu0 %v3100_v53 }
0x1676   :  { %3464 = vmatpush3.msra.mxu0 %v3100_v53 }
0x1677   :  { %3465 = vmatprep.subr.mxu0 %v3099_v54 }
0x1678   :  { %3466 = vmatpush3.msra.mxu0 %v3099_v54 }
0x1679   :  { %3467 = vmatprep.subr.mxu0 %v3098_v61 }
0x167a   :  { %3468 = vmatpush3.msra.mxu0 %v3098_v61 }
0x167b   :  { %3469 = vmatprep.subr.mxu0 %v3097_v62 }
0x167c   :  { %3470 = vmatpush3.msra.mxu0 %v3097_v62 }
0x172c   :  { %v2532_v27 = vpop.f32.mrf.mxu0 }
0x172e   :  { %v3433_v23 = vpop.f32.mrf.mxu0 }
0x1730   :  { %v2456_v17 = vpop.f32.mrf.mxu1  ;;  %v3447_v19 = vpop.f32.mrf.mxu0 }
0x1731   :  { %3438 = vmatprep.mubr.msk.f32.mxu1 %vm493_vm2, %v2456_v17 }
0x1732   :  { %v3428_v18 = vpop.f32.mrf.mxu1  ;;  %3439 = vmatmul.mubr.msk.f32.vlgmr.msra.gmra.mxu1 %vm493_vm2, %v2532_v27  ;;  %v2689_v22 = vpop.f32.mrf.mxu0 }
0x1733   :  { %3449 = vmatpush3.msra.mxu1 %v1569_v38  ;;  %v2956_v38 = vld [vmem:[#allocation11 + $0x10] sm:$0xff] }
0x1734   :  { %3450 = vmatprep.subr.mxu1 %v1568_v39 }
0x1735   :  { %3451 = vmatpush3.msra.mxu1 %v1568_v39  ;;  %v2954_v39 = vld [vmem:[#allocation11] sm:$0xff] }
0x1736   :  { %3452 = vmatprep.subr.mxu1 %v1567_v40 }
0x1737   :  { %3453 = vmatpush3.msra.mxu1 %v1567_v40 }
0x1738   :  { %3454 = vmatprep.subr.mxu1 %v1566_v41 }
0x1739   :  { %3455 = vmatpush3.msra.mxu1 %v1566_v41 }
0x173a   :  { %3474 = vmatprep.subr.mxu1 %v3728_v63 }
0x17f2   :  { %v3440_v20 = vpop.f32.mrf.mxu1 }
0x17f3   :  { %v2695_v21 = vadd.f32 %v3447_v19, %v3440_v20 }
0x17f4   :  { %v2608_v24 = vpop.f32.mrf.mxu1 }
0x17f5   :  { %v4217_v2 = vadd.f32 %v2695_v21, %v4076_v15  ;;  %v2690_v25 = vadd.f32 %v2689_v22, %v2608_v24 }
0x17f7   :  { %v4220_v5 = vadd.f32 %v2690_v25, %v4079_v16  ;;  %v2703_v28 = vsel %vm136_vm0, %v4217_v2, 0.0 }
0x17f8   :  { %2704 = vadd.xlane.f32.xlu0 %v2703_v28 }
0x17f9   :  { %v2700_v29 = vsel %vm136_vm0, %v4220_v5, 0.0 }
0x17fa   :  { %2701 = vadd.xlane.f32.xlu1 %v2700_v29 }
0x1881   :  { %v2705_v30 = vpop.xlane.xlu0 %2704 }
0x1882   :  { %v2707_v31 = vmul.f32 0.03125, %v2705_v30 }
0x1883   :  { %v2702_v33 = vpop.xlane.xlu1 %2701 }
0x1884   :  { %v2709_v34 = vsub.f32 %v4217_v2, %v2707_v31  ;;  %v2706_v35 = vmul.f32 0.03125, %v2702_v33 }
0x1886   :  { %v2708_v15 = vsub.f32 %v4220_v5, %v2706_v35  ;;  %v2711_v36 = vmul.f32 %v2709_v34, %v2709_v34 }
0x1888   :  { %v2715_v16 = vsel %vm136_vm0, %v2711_v36, 0.0  ;;  %v2710_v37 = vmul.f32 %v2708_v15, %v2708_v15 }
0x1889   :  { %2716 = vadd.xlane.f32.xlu1 %v2715_v16 }
0x188a   :  { %v2712_v57 = vsel %vm136_vm0, %v2710_v37, 0.0 }
0x188b   :  { %2713 = vadd.xlane.f32.xlu0 %v2712_v57  ;;  %v2957_v57 = vld [vmem:[#allocation11 + $0x18] sm:$0xff] }
0x1912   :  { %v2717_v42 = vpop.xlane.xlu1 %2716 }
0x1913   :  { %v2719_v45 = vmul.f32 0.03125, %v2717_v42 }
0x1914   :  { %v2714_v44 = vpop.xlane.xlu0 %2713 }
0x1915   :  { %v2721_v55 = vadd.f32 1e-05, %v2719_v45  ;;  %v2718_v56 = vmul.f32 0.03125, %v2714_v44 }
0x1917   :  { %v2720_v58 = vadd.f32 1e-05, %v2718_v56  ;;  %3556 = vrsqrt.f32 %v2721_v55 }
0x1919   :  { %3558 = vrsqrt.f32 %v2720_v58 }
0x1924   :  { %v3557_v47 = vpop.eup %3556 }
0x1925   :  { %v2725_v50 = vmul.f32 %v3557_v47, %v2709_v34 }
0x1926   :  { %v3559_v48 = vpop.eup %3558 }
0x1927   :  { %v2724_v49 = vmul.f32 %v3559_v48, %v2708_v15  ;;  %v3129_v48 = vld [vmem:[%s4283_s11] ss:$0 sm:$0xff] }
0x1929   :  { %3456 = vmatprep.mubr.msk.f32.mxu1 %vm136_vm0, %v2724_v49 }
0x192a   :  { %3457 = vmatmul.mubr.msk.f32.vlgmr.msra.gmra.mxu1 %vm136_vm0, %v2725_v50 }
0x192b   :  { %3482 = vmatprep.mubr.msk.f32.mxu1 %vm3729_vm1, %v3728_v63  ;;  %3475 = vmatpush3.msra.mxu1 %v2957_v57 }
0x192c   :  { %3476 = vmatprep.subr.mxu1 %v3728_v63 }
0x192d   :  { %3477 = vmatpush3.msra.mxu1 %v2956_v38 }
0x192e   :  { %3478 = vmatprep.subr.mxu1 %v3728_v63 }
0x19ea   :  { %v3458_v0 = vpop.f32.mrf.mxu1 }
0x19eb   :  { %2829 = vrot.lane.b32.xlu1 %v3458_v0, %s3731_s29  ;;  %v2808_v7 = vmul.f32 %v3458_v0, %v3458_v0 }
0x19ec   :  { %v2798_v3 = vpop.f32.mrf.mxu1 }
0x19ed   :  { %2827 = vrot.lane.b32.xlu0 %v2798_v3, %s3731_s29  ;;  %v2807_v32 = vmul.f32 %v2798_v3, %v2798_v3  ;;  %v2810_v9 = vmul.f32 %v3458_v0, %v2808_v7 }
0x19ef   :  { %v2809_v6 = vmul.f32 %v2807_v32, %v2798_v3  ;;  %v2812_v8 = vmul.f32 0.044715, %v2810_v9 }
0x19f1   :  { %v2811_v26 = vmul.f32 0.044715, %v2809_v6  ;;  %v2814_v10 = vadd.f32 %v3458_v0, %v2812_v8 }
0x19f3   :  { %v2813_v46 = vadd.f32 %v2811_v26, %v2798_v3  ;;  %v2816_v1 = vmul.f32 0.7978846, %v2814_v10 }
0x19f5   :  { %v2815_v59 = vmul.f32 0.7978846, %v2813_v46 }
0x19f7   :  { %3560 = vtanh.f32 %v2815_v59 }
0x19f8   :  { %3562 = vtanh.f32 %v2816_v1 }
0x1a04   :  { %v3561_v4 = vpop.eup %3560 }
0x1a05   :  { %v3563_v11 = vpop.eup %3562  ;;  %v2819_v60 = vadd.f32 1.0, %v3561_v4 }
0x1a06   :  { %v2820_v43 = vadd.f32 1.0, %v3563_v11 }
0x1a07   :  { %v2821_v12 = vmul.f32 0.5, %v2819_v60 }
0x1a08   :  { %v2822_v13 = vmul.f32 0.5, %v2820_v43 }
0x1a09   :  { %v2823_v27 = vmul.f32 %v2821_v12, %v2798_v3 }
0x1a0a   :  { %v2824_v23 = vmul.f32 %v3458_v0, %v2822_v13 }
0x1a5d   :  { %v2830_v14 = vpop.permute.xlu1 %2829 }
0x1a5e   :  { %v2834_v19 = vmul.f32 %v2830_v14, %v2824_v23 }
0x1a5f   :  { %v2828_v17 = vpop.permute.xlu0 %2827 }
0x1a60   :  { %v2833_v18 = vmul.f32 %v2828_v17, %v2823_v27 }
0x1a62   :  { %3471 = vmatprep.mubr.msk.f32.mxu0 %vm1471_vm4, %v2833_v18 }
0x1a63   :  { %3472 = vmatmul.mubr.msk.f32.vlgmr.msra.gmra.mxu0 %vm1471_vm4, %v2834_v19 }
0x1b23   :  { %v3473_v20 = vpop.f32.mrf.mxu0 }
0x1b24   :  { %v2917_v21 = vadd.f32 %v3473_v20, %v4217_v2 }
0x1b25   :  { %v2907_v22 = vpop.f32.mrf.mxu0 }
0x1b26   :  { %v2920_v24 = vrot.slane %v2917_v21, 7  ;;  %v2916_v25 = vadd.f32 %v2907_v22, %v4220_v5  ;;  %v2955_v5 = vld [vmem:[#allocation11 + $0x8] sm:$0xff] }
0x1b27   :  { %3479 = vmatpush3.msra.mxu1 %v2955_v5 }
0x1b28   :  { %v2922_v28 = vsel %vm2921_vm5, %v2920_v24, %v2916_v25  ;;  %3480 = vmatprep.subr.mxu1 %v3728_v63 }
0x1b29   :  { %v2925_v29 = vsel %vm2924_vm6, %v2922_v28, 0.0  ;;  %3481 = vmatpush3.msra.mxu1 %v2954_v39 }
0x1b2a   :  { %2926 = vadd.xlane.f32.xlu1 %v2925_v29 }
0x1bb3   :  { %v2927_v30 = vpop.xlane.xlu1 %2926 }
0x1bb4   :  { %v2928_v31 = vmul.f32 0.03125, %v2927_v30 }
0x1bb6   :  { %v2930_v33 = vrot.slane %v2928_v31, 1  ;;  %v2933_v34 = vsub.f32 %v2916_v25, %v2928_v31 }
0x1bb8   :  { %v2934_v35 = vsub.f32 %v2917_v21, %v2930_v33  ;;  %v2935_v36 = vmul.f32 %v2933_v34, %v2933_v34 }
0x1bba   :  { %v2936_v15 = vmul.f32 %v2934_v35, %v2934_v35 }
0x1bbc   :  { %v2939_v16 = vrot.slane %v2936_v15, 7 }
0x1bbe   :  { %v2940_v2 = vsel %vm2921_vm5, %v2939_v16, %v2935_v36 }
0x1bbf   :  { %v2942_v37 = vsel %vm2924_vm6, %v2940_v2, 0.0 }
0x1bc0   :  { %2943 = vadd.xlane.f32.xlu0 %v2942_v37 }
0x1c49   :  { %v2944_v40 = vpop.xlane.xlu0 %2943 }
0x1c4a   :  { %v2945_v41 = vmul.f32 0.03125, %v2944_v40 }
0x1c4c   :  { %v2946_v42 = vadd.f32 1e-05, %v2945_v41 }
0x1c4e   :  { %3564 = vrsqrt.f32 %v2946_v42 }
0x1c5b   :  { %v3565_v45 = vpop.eup %3564 }
0x1c5c   :  { %v2949_v44 = vrot.slane %v3565_v45, 1  ;;  %v2952_v56 = vmul.f32 %v3565_v45, %v2933_v34 }
0x1c5e   :  { %v2953_v55 = vmul.f32 %v2949_v44, %v2934_v35 }
0x1c60   :  { %v2967_v58 = vrot.slane %v2953_v55, 7 }
0x1c62   :  { %v2968_v47 = vsel %vm2921_vm5, %v2967_v58, %v2952_v56 }
0x1c63   :  { %3483 = vmatmul.mubr.msk.f32.vlgmr.msra.gmra.mxu1 %vm136_vm0, %v2968_v47 }
0x1d23   :  { %v3037_v63 = vpop.f32.mrf.mxu1 }
0x1d24   :  { %v3038_v49 = vadd.f32 %v3129_v48, %v3037_v63 }
0x1d25   :  { %v3484_v50 = vpop.f32.mrf.mxu1 }
0x1d26   :  { %3041 = vst [vmem:[#allocation13] sm:$0x3] %v3038_v49 }
0x1d27   :  { %3697 = shalt.err (!%p3694_p6)
}
0x1d28   :  { %3051 = dma.vmem_to_hbm [thread:$0]  %s3049_s8, 32, %s4284_s12, [#allocation4]  }
0x1d29   :  { %3714 = dma.done.wait [#allocation4], 32  }
0x1d2a   :  { %3715 = vsyncadd [#allocation4], 4294967264 }
0x1d2b   :  { %3055 = vsyncpa [#allocation3], 1 }
0x1d2c   :  { %3056 = vsyncpa [#allocation6], 1 }
0x1d2d   :  { %3057 = vsyncpa [#allocation9], 1 }
0x1d2e   :  { %3058 = vsyncpa [#allocation12], 1 }
0x1d2f   :  { %3059 = vsyncpa [#allocation4], 1 }

</bundles_post_ra>
